<compile_context>
chip_gen: v7x
topology: tpu7x:2x2x1
jax: 0.10.0
libtpu: 0.0.40
codegen_flags: <defaults>
</compile_context>

<pallas_src>
import functools

import jax
import jax.numpy as jnp
from jax.experimental import pallas as pl
from jax.experimental.pallas import tpu as pltpu


def attention_kernel(qp_ref, v_ref, wv_ref, bv_ref, w0_ref, b0_ref,
                     w1_ref, b1_ref, out_ref, *, G):
    # qp_ref: (Bt, F) f32, v_ref: (Bt, R, Dv) f32, wv/w0/w1: bf16, out_ref: (Bt, Op) f32
    Bt, R, Dv = v_ref.shape
    F = qp_ref.shape[1]
    Gp = w1_ref.shape[1]
    Op = out_ref.shape[1]
    bf16 = jnp.bfloat16

    v3 = v_ref[...]                                   # (Bt, R, Dv) f32
    v2 = v3.reshape(Bt * R, Dv)                       # (Bt*R, Dv)

    # --- fusion: Hadamard of (precomputed) q-projection and v-projection ---
    vp = jnp.dot(v2.astype(bf16), wv_ref[...],
                 preferred_element_type=jnp.float32) + bv_ref[...]           # (Bt*R, F)
    qp = jnp.broadcast_to(qp_ref[...][:, None, :], (Bt, R, F)).reshape(Bt * R, F)
    alpha = qp * vp                                                          # (Bt*R, F) f32

    # --- glimpse MLP: Linear -> ReLU -> Linear (head lane-padded to Gp=128) ---
    h = jnp.dot(alpha.astype(bf16), w0_ref[...],
                preferred_element_type=jnp.float32) + b0_ref[...]            # (Bt*R, H)
    h = jnp.maximum(h, 0.0)
    logits = jnp.dot(h.astype(bf16), w1_ref[...],
                     preferred_element_type=jnp.float32) + b1_ref[...]       # (Bt*R, Gp)
    logits = logits.reshape(Bt, R, Gp)                                       # keep padded lanes

    # --- softmax over regions (torch dim=1); padded lanes >= G are never read ---
    m = jnp.max(logits, axis=1, keepdims=True)
    e = jnp.exp(logits - m)
    sm = e * pl.reciprocal(jnp.sum(e, axis=1, keepdims=True), approx=False)  # (Bt, R, Gp)

    # --- per-glimpse weighted sum over regions (VPU mul + sublane reduce) ---
    outs = [jnp.sum(sm[:, :, g:g + 1] * v3, axis=1) for g in range(G)]       # G x (Bt, Dv)
    out = jnp.concatenate(outs, axis=-1)                                     # (Bt, G*Dv)
    pad = Op - G * Dv
    if pad > 0:   # lane-pad the store to a full 128-lane slab (unmasked vst)
        out = jnp.concatenate([out, jnp.zeros((Bt, pad), out.dtype)], axis=-1)
    out_ref[...] = out.astype(out_ref.dtype)


def _chip_tuning():
    """(rows_per_step, even_grid_count, vmem_cap_bytes) per TPU generation."""
    try:
        kind = jax.devices()[0].device_kind.lower()
    except Exception:  # pragma: no cover
        kind = ""
    if "v5 lite" in kind or "v5e" in kind:
        return 128, False, 100 << 20      # 4x128 MXU: 128 rows already fill it
    if "v6" in kind:
        return 512, False, 100 << 20      # 2x256 MXU: 2 passes per weight load
    if "v7" in kind:
        return 256, True, 56 << 20        # 64 MiB/TC; even grid count for 2 TCs
    return 256, False, 100 << 20


def attention_forward(q, v, params, glimpses, rows_target=None):
    """q: (B, Dq) f32, v: (B, R, Dv) f32 -> (B, G*Dv) f32."""
    B, Dq = q.shape
    _, R, Dv = v.shape
    wq, bq, wv, bv, w0, b0, w1, b1 = params
    F = wq.shape[1]
    H = w0.shape[1]
    G = glimpses
    bf16 = jnp.bfloat16

    default_rows, even_grid, vmem_cap = _chip_tuning()
    if rows_target is None:
        rows_target = default_rows

    # Lane-pad the tiny glimpse head (H, G) to a full 128-lane matmul.
    Gp = 128
    w1p = jnp.zeros((H, Gp), w1.dtype).at[:, :G].set(w1)
    b1p = jnp.zeros((1, Gp), b1.dtype).at[:, :G].set(b1)

    # Pre-cast weights to bf16 once (the matmuls accumulate in f32 regardless).
    wv_b = wv.astype(bf16)
    w0_b = w0.astype(bf16)
    w1p_b = w1p.astype(bf16)

    # Hoist the q projection: its Bt-row LHS would waste the MXU inside the grid.
    qp = (q @ wq + bq).astype(jnp.float32)            # (B, F)

    # Lane-dense output slab (multiple of 128), sliced back below.
    GD = G * Dv
    Op = max(128, pl.cdiv(GD, 128) * 128)

    # Rows per grid step ~ MXU height; Bt must be a multiple of 8 (sublane).
    Bt = min(max(8, 8 * (rows_target // (8 * max(R, 1)))), pl.cdiv(B, 8) * 8)
    nsteps = pl.cdiv(B, Bt)
    if even_grid and nsteps > 1 and nsteps % 2 == 1:
        nsteps += 1                                    # keep both v7x TCs busy
    Bp = nsteps * Bt
    if Bp != B:
        qp = jnp.pad(qp, ((0, Bp - B), (0, 0)))
        v = jnp.pad(v, ((0, Bp - B), (0, 0), (0, 0)))

    # VMEM budget: resident weights + double-buffered blocks + activations + slack.
    weight_bytes = 2 * (wv_b.size + w0_b.size + w1p_b.size) \
        + 4 * (bv.size + b0.size + b1p.size)
    block_bytes = 4 * (Bt * F + Bt * R * Dv + Bt * Op)
    act_bytes = 4 * Bt * R * (2 * F + H + Gp)
    vmem_limit = int(weight_bytes + 2 * block_bytes + 2 * act_bytes + (8 << 20))
    vmem_limit = max(32 << 20, min(vmem_limit, vmem_cap))

    flops = (2 * Bp * R * (Dv * F + F * H + H * Gp + G * Dv) + 6 * Bp * R * F)
    bytes_accessed = (4 * (Bp * F + Bp * R * Dv + Bp * Op)
                      + weight_bytes)
    transcendentals = Bp * R * Gp

    def _run(resident_weights):
        if resident_weights:
            # Whole array held once in VMEM for the kernel's lifetime: no per-step
            # DMA, no double-buffering of constant operands.
            wspec = lambda shape: pl.BlockSpec(memory_space=pltpu.MemorySpace.VMEM)
        else:
            wspec = lambda shape: pl.BlockSpec(shape, lambda b: (0,) * len(shape))
        return pl.pallas_call(
            functools.partial(attention_kernel, G=G),
            out_shape=jax.ShapeDtypeStruct((Bp, Op), jnp.float32),
            grid_spec=pltpu.PrefetchScalarGridSpec(
                num_scalar_prefetch=0,
                grid=(Bp // Bt,),
                in_specs=[
                    pl.BlockSpec((Bt, F), lambda b: (b, 0)),
                    pl.BlockSpec((Bt, R, Dv), lambda b: (b, 0, 0)),
                    wspec((Dv, F)), wspec((1, F)),
                    wspec((F, H)), wspec((1, H)),
                    wspec((H, Gp)), wspec((1, Gp)),
                ],
                out_specs=pl.BlockSpec((Bt, Op), lambda b: (b, 0)),
            ),
            compiler_params=pltpu.CompilerParams(
                dimension_semantics=("parallel",),
                vmem_limit_bytes=vmem_limit),
            cost_estimate=pl.CostEstimate(
                flops=flops, transcendentals=transcendentals,
                bytes_accessed=bytes_accessed),
        )(qp, v, wv_b, bv, w0_b, b0, w1p_b, b1p)

    try:
        out = _run(True)
    except Exception:
        # Fall back to default (pipelined, double-buffered) weight specs if the
        # VMEM-resident whole-array form does not lower on this jax version.
        out = _run(False)

    # torch.cat(v_outs, dim=1) == (B, G, Dv) flattened to (B, G*Dv)
    return out[:B, :GD]


def reference_forward(q, v, params, glimpses):
    wq, bq, wv, bv, w0, b0, w1, b1 = params
    B, Dq = q.shape
    _, R, Dv = v.shape
    qe = jnp.broadcast_to(q[:, None, :], (B, R, Dq))
    alpha = (qe @ wq + bq) * (v @ wv + bv)
    h = jnp.maximum(alpha @ w0 + b0, 0.0)
    logits = h @ w1 + b1                          # (B, R, G)
    sm = jax.nn.softmax(logits, axis=1)
    out = jnp.einsum('brg,brd->bgd', sm, v)
    return out.reshape(B, glimpses * Dv)


if __name__ == "__main__":
    B, R, Dq, Dv = 8, 8, 32, 32
    F_dim, H, G = 64, 512, 2

    key = jax.random.PRNGKey(0)
    ks = jax.random.split(key, 10)
    q = jax.random.normal(ks[0], (B, Dq), jnp.float32)
    v = jax.random.normal(ks[1], (B, R, Dv), jnp.float32)

    params = (
        jax.random.normal(ks[2], (Dq, F_dim), jnp.float32) * 0.1,
        jax.random.normal(ks[3], (1, F_dim), jnp.float32) * 0.1,
        jax.random.normal(ks[4], (Dv, F_dim), jnp.float32) * 0.1,
        jax.random.normal(ks[5], (1, F_dim), jnp.float32) * 0.1,
        jax.random.normal(ks[6], (F_dim, H), jnp.float32) * 0.05,
        jax.random.normal(ks[7], (1, H), jnp.float32) * 0.05,
        jax.random.normal(ks[8], (H, G), jnp.float32) * 0.05,
        jax.random.normal(ks[9], (1, G), jnp.float32) * 0.05,
    )

    out = attention_forward(q, v, params, G)
    out = jax.block_until_ready(out)

    ref = reference_forward(q, v, params, G)
    assert out.shape == (B, G * Dv), out.shape
    # bf16 matmul operands (f32 accumulation) -> compare with bf16-level tolerance.
    assert jnp.allclose(out, ref, atol=2e-2, rtol=2e-2), \
        f"max abs err {jnp.max(jnp.abs(out - ref))}"
    print("KERNEL_OK")
</pallas_src>

<mosaic_0001>
module attributes {stable_mosaic.version = 11 : i64} {
  func.func @attention_kernel(%arg0: i32, %arg1: memref<8x64xf32, #tpu.memory_space<vmem>>, %arg2: memref<8x8x32xf32, #tpu.memory_space<vmem>>, %arg3: memref<32x64xbf16, #tpu.memory_space<vmem>>, %arg4: memref<1x64xf32, #tpu.memory_space<vmem>>, %arg5: memref<64x512xbf16, #tpu.memory_space<vmem>>, %arg6: memref<1x512xf32, #tpu.memory_space<vmem>>, %arg7: memref<512x128xbf16, #tpu.memory_space<vmem>>, %arg8: memref<1x128xf32, #tpu.memory_space<vmem>>, %arg9: memref<8x128xf32, #tpu.memory_space<vmem>>) attributes {dimension_semantics = [#tpu.dimension_semantics<parallel>], iteration_bounds = array<i64: 1>, scalar_prefetch = 0 : i64, scratch_operands = 0 : i64, tpu.core_type = #tpu.core_type<tc>, window_params = [{transform_indices = @transform_0, window_bounds = array<i64: 8, 64>}, {transform_indices = @transform_1, window_bounds = array<i64: 8, 8, 32>}, {pipeline_mode = #tpu.pipeline_mode<synchronous>, transform_indices = @transform_2, window_bounds = array<i64: 32, 64>}, {pipeline_mode = #tpu.pipeline_mode<synchronous>, transform_indices = @transform_3, window_bounds = array<i64: 1, 64>}, {pipeline_mode = #tpu.pipeline_mode<synchronous>, transform_indices = @transform_4, window_bounds = array<i64: 64, 512>}, {pipeline_mode = #tpu.pipeline_mode<synchronous>, transform_indices = @transform_5, window_bounds = array<i64: 1, 512>}, {pipeline_mode = #tpu.pipeline_mode<synchronous>, transform_indices = @transform_6, window_bounds = array<i64: 512, 128>}, {pipeline_mode = #tpu.pipeline_mode<synchronous>, transform_indices = @transform_7, window_bounds = array<i64: 1, 128>}, {transform_indices = @transform_8, window_bounds = array<i64: 8, 128>}]} {
    %c0 = arith.constant 0 : index
    %c0_0 = arith.constant 0 : index
    %c0_1 = arith.constant 0 : index
    %0 = vector.load %arg2[%c0, %c0_0, %c0_1] : memref<8x8x32xf32, #tpu.memory_space<vmem>>, vector<8x8x32xf32>
    %1 = vector.shape_cast %0 : vector<8x8x32xf32> to vector<64x32xf32>
    %2 = arith.truncf %1 : vector<64x32xf32> to vector<64x32xbf16>
    %c0_2 = arith.constant 0 : index
    %c0_3 = arith.constant 0 : index
    %3 = vector.load %arg3[%c0_2, %c0_3] : memref<32x64xbf16, #tpu.memory_space<vmem>>, vector<32x64xbf16>
    %cst = arith.constant dense<0.000000e+00> : vector<64x64xf32>
    %4 = tpu.matmul %2, %3, %cst {dimension_numbers = #tpu.dot_dimension_numbers<[1], [0], [0], [1], [0, 0, 1, 1], [], []>} : vector<64x32xbf16>, vector<32x64xbf16>, vector<64x64xf32> -> vector<64x64xf32>
    %c0_4 = arith.constant 0 : index
    %c0_5 = arith.constant 0 : index
    %5 = vector.load %arg4[%c0_4, %c0_5] : memref<1x64xf32, #tpu.memory_space<vmem>>, vector<1x64xf32>
    %6 = vector.broadcast %5 : vector<1x64xf32> to vector<64x64xf32>
    %7 = arith.addf %4, %6 : vector<64x64xf32>
    %c0_6 = arith.constant 0 : index
    %c0_7 = arith.constant 0 : index
    %8 = vector.load %arg1[%c0_6, %c0_7] : memref<8x64xf32, #tpu.memory_space<vmem>>, vector<8x64xf32>
    %9 = vector.shape_cast %8 : vector<8x64xf32> to vector<8x1x64xf32>
    %10 = vector.shape_cast %9 : vector<8x1x64xf32> to vector<8x1x64xf32>
    %11 = vector.broadcast %10 : vector<8x1x64xf32> to vector<8x8x64xf32>
    %12 = vector.shape_cast %11 : vector<8x8x64xf32> to vector<64x64xf32>
    %13 = arith.mulf %12, %7 : vector<64x64xf32>
    %14 = arith.truncf %13 : vector<64x64xf32> to vector<64x64xbf16>
    %c0_8 = arith.constant 0 : index
    %c0_9 = arith.constant 0 : index
    %15 = vector.load %arg5[%c0_8, %c0_9] : memref<64x512xbf16, #tpu.memory_space<vmem>>, vector<64x512xbf16>
    %cst_10 = arith.constant dense<0.000000e+00> : vector<64x512xf32>
    %16 = tpu.matmul %14, %15, %cst_10 {dimension_numbers = #tpu.dot_dimension_numbers<[1], [0], [0], [1], [0, 0, 1, 1], [], []>} : vector<64x64xbf16>, vector<64x512xbf16>, vector<64x512xf32> -> vector<64x512xf32>
    %c0_11 = arith.constant 0 : index
    %c0_12 = arith.constant 0 : index
    %17 = vector.load %arg6[%c0_11, %c0_12] : memref<1x512xf32, #tpu.memory_space<vmem>>, vector<1x512xf32>
    %18 = vector.broadcast %17 : vector<1x512xf32> to vector<64x512xf32>
    %19 = arith.addf %16, %18 : vector<64x512xf32>
    %cst_13 = arith.constant 0.000000e+00 : f32
    %20 = vector.broadcast %cst_13 : f32 to vector<64x512xf32>
    %21 = arith.maximumf %19, %20 : vector<64x512xf32>
    %22 = arith.truncf %21 : vector<64x512xf32> to vector<64x512xbf16>
    %c0_14 = arith.constant 0 : index
    %c0_15 = arith.constant 0 : index
    %23 = vector.load %arg7[%c0_14, %c0_15] : memref<512x128xbf16, #tpu.memory_space<vmem>>, vector<512x128xbf16>
    %cst_16 = arith.constant dense<0.000000e+00> : vector<64x128xf32>
    %24 = tpu.matmul %22, %23, %cst_16 {dimension_numbers = #tpu.dot_dimension_numbers<[1], [0], [0], [1], [0, 0, 1, 1], [], []>} : vector<64x512xbf16>, vector<512x128xbf16>, vector<64x128xf32> -> vector<64x128xf32>
    %c0_17 = arith.constant 0 : index
    %c0_18 = arith.constant 0 : index
    %25 = vector.load %arg8[%c0_17, %c0_18] : memref<1x128xf32, #tpu.memory_space<vmem>>, vector<1x128xf32>
    %26 = vector.broadcast %25 : vector<1x128xf32> to vector<64x128xf32>
    %27 = arith.addf %24, %26 : vector<64x128xf32>
    %28 = vector.shape_cast %27 : vector<64x128xf32> to vector<8x8x128xf32>
    %cst_19 = arith.constant dense<0xFF800000> : vector<8x128xf32>
    %29 = vector.multi_reduction <maximumf>, %28, %cst_19 [1] : vector<8x8x128xf32> to vector<8x128xf32>
    %30 = vector.shape_cast %29 : vector<8x128xf32> to vector<8x1x128xf32>
    %31 = vector.broadcast %30 : vector<8x1x128xf32> to vector<8x8x128xf32>
    %32 = arith.subf %28, %31 : vector<8x8x128xf32>
    %33 = math.exp %32 : vector<8x8x128xf32>
    %cst_20 = arith.constant dense<0.000000e+00> : vector<8x128xf32>
    %34 = vector.multi_reduction <add>, %33, %cst_20 [1] : vector<8x8x128xf32> to vector<8x128xf32>
    %35 = vector.shape_cast %34 : vector<8x128xf32> to vector<8x1x128xf32>
    %36 = tpu.reciprocal %35 : vector<8x1x128xf32> -> vector<8x1x128xf32>
    %37 = vector.broadcast %36 : vector<8x1x128xf32> to vector<8x8x128xf32>
    %38 = arith.mulf %33, %37 : vector<8x8x128xf32>
    %39 = vector.extract_strided_slice %38 {offsets = [0, 0, 0], sizes = [8, 8, 1], strides = [1, 1, 1]} : vector<8x8x128xf32> to vector<8x8x1xf32>
    %40 = vector.broadcast %39 : vector<8x8x1xf32> to vector<8x8x32xf32>
    %41 = arith.mulf %40, %0 : vector<8x8x32xf32>
    %cst_21 = arith.constant dense<0.000000e+00> : vector<8x32xf32>
    %42 = vector.multi_reduction <add>, %41, %cst_21 [1] : vector<8x8x32xf32> to vector<8x32xf32>
    %43 = vector.extract_strided_slice %38 {offsets = [0, 0, 1], sizes = [8, 8, 1], strides = [1, 1, 1]} : vector<8x8x128xf32> to vector<8x8x1xf32>
    %44 = vector.broadcast %43 : vector<8x8x1xf32> to vector<8x8x32xf32>
    %45 = arith.mulf %44, %0 : vector<8x8x32xf32>
    %cst_22 = arith.constant dense<0.000000e+00> : vector<8x32xf32>
    %46 = vector.multi_reduction <add>, %45, %cst_22 [1] : vector<8x8x32xf32> to vector<8x32xf32>
    %47 = tpu.concatenate %42, %46 in 1 : vector<8x32xf32>, vector<8x32xf32> -> vector<8x64xf32>
    %cst_23 = arith.constant 0.000000e+00 : f32
    %48 = vector.broadcast %cst_23 : f32 to vector<8x64xf32>
    %49 = tpu.concatenate %47, %48 in 1 : vector<8x64xf32>, vector<8x64xf32> -> vector<8x128xf32>
    %c0_24 = arith.constant 0 : index
    %c0_25 = arith.constant 0 : index
    %50 = vector.load %arg9[%c0_24, %c0_25] : memref<8x128xf32, #tpu.memory_space<vmem>>, vector<8x128xf32>
    tpu.vector_store %arg9[%c0_24, %c0_25], %49 {strides = array<i32>} : memref<8x128xf32, #tpu.memory_space<vmem>>, vector<8x128xf32>,
    return
  }
  func.func @transform_0(%arg0: i32) -> (i32, i32) {
    %c0_i32 = arith.constant 0 : i32
    %c0_i32_0 = arith.constant 0 : i32
    return %arg0, %c0_i32 : i32, i32
  }
  func.func @transform_1(%arg0: i32) -> (i32, i32, i32) {
    %c0_i32 = arith.constant 0 : i32
    %c0_i32_0 = arith.constant 0 : i32
    %c0_i32_1 = arith.constant 0 : i32
    return %arg0, %c0_i32, %c0_i32_0 : i32, i32, i32
  }
  func.func @transform_2(%arg0: i32) -> (i32, i32) {
    %c0_i32 = arith.constant 0 : i32
    %c0_i32_0 = arith.constant 0 : i32
    %c0_i32_1 = arith.constant 0 : i32
    return %c0_i32, %c0_i32_0 : i32, i32
  }
  func.func @transform_3(%arg0: i32) -> (i32, i32) {
    %c0_i32 = arith.constant 0 : i32
    %c0_i32_0 = arith.constant 0 : i32
    %c0_i32_1 = arith.constant 0 : i32
    return %c0_i32, %c0_i32_0 : i32, i32
  }
  func.func @transform_4(%arg0: i32) -> (i32, i32) {
    %c0_i32 = arith.constant 0 : i32
    %c0_i32_0 = arith.constant 0 : i32
    %c0_i32_1 = arith.constant 0 : i32
    return %c0_i32, %c0_i32_0 : i32, i32
  }
  func.func @transform_5(%arg0: i32) -> (i32, i32) {
    %c0_i32 = arith.constant 0 : i32
    %c0_i32_0 = arith.constant 0 : i32
    %c0_i32_1 = arith.constant 0 : i32
    return %c0_i32, %c0_i32_0 : i32, i32
  }
  func.func @transform_6(%arg0: i32) -> (i32, i32) {
    %c0_i32 = arith.constant 0 : i32
    %c0_i32_0 = arith.constant 0 : i32
    %c0_i32_1 = arith.constant 0 : i32
    return %c0_i32, %c0_i32_0 : i32, i32
  }
  func.func @transform_7(%arg0: i32) -> (i32, i32) {
    %c0_i32 = arith.constant 0 : i32
    %c0_i32_0 = arith.constant 0 : i32
    %c0_i32_1 = arith.constant 0 : i32
    return %c0_i32, %c0_i32_0 : i32, i32
  }
  func.func @transform_8(%arg0: i32) -> (i32, i32) {
    %c0_i32 = arith.constant 0 : i32
    %c0_i32_0 = arith.constant 0 : i32
    return %arg0, %c0_i32 : i32, i32
  }
}

module attributes {stable_mosaic.version = 11 : i64} {
  func.func @attention_kernel(%arg0: i32, %arg1: memref<8x64xf32, #tpu.memory_space<vmem>>, %arg2: memref<8x8x32xf32, #tpu.memory_space<vmem>>, %arg3: memref<32x64xbf16, #tpu.memory_space<vmem>>, %arg4: memref<1x64xf32, #tpu.memory_space<vmem>>, %arg5: memref<64x512xbf16, #tpu.memory_space<vmem>>, %arg6: memref<1x512xf32, #tpu.memory_space<vmem>>, %arg7: memref<512x128xbf16, #tpu.memory_space<vmem>>, %arg8: memref<1x128xf32, #tpu.memory_space<vmem>>, %arg9: memref<8x128xf32, #tpu.memory_space<vmem>>) attributes {dimension_semantics = [#tpu.dimension_semantics<parallel>], iteration_bounds = array<i64: 1>, scalar_prefetch = 0 : i64, scratch_operands = 0 : i64, tpu.core_type = #tpu.core_type<tc>, window_params = [{transform_indices = @transform_0, window_bounds = array<i64: 8, 64>}, {transform_indices = @transform_1, window_bounds = array<i64: 8, 8, 32>}, {pipeline_mode = #tpu.pipeline_mode<synchronous>, transform_indices = @transform_2, window_bounds = array<i64: 32, 64>}, {pipeline_mode = #tpu.pipeline_mode<synchronous>, transform_indices = @transform_3, window_bounds = array<i64: 1, 64>}, {pipeline_mode = #tpu.pipeline_mode<synchronous>, transform_indices = @transform_4, window_bounds = array<i64: 64, 512>}, {pipeline_mode = #tpu.pipeline_mode<synchronous>, transform_indices = @transform_5, window_bounds = array<i64: 1, 512>}, {pipeline_mode = #tpu.pipeline_mode<synchronous>, transform_indices = @transform_6, window_bounds = array<i64: 512, 128>}, {pipeline_mode = #tpu.pipeline_mode<synchronous>, transform_indices = @transform_7, window_bounds = array<i64: 1, 128>}, {transform_indices = @transform_8, window_bounds = array<i64: 8, 128>}]} {
    %c0 = arith.constant 0 : index
    %c0_0 = arith.constant 0 : index
    %c0_1 = arith.constant 0 : index
    %0 = vector.load %arg2[%c0, %c0_0, %c0_1] : memref<8x8x32xf32, #tpu.memory_space<vmem>>, vector<8x8x32xf32>
    %1 = vector.shape_cast %0 : vector<8x8x32xf32> to vector<64x32xf32>
    %2 = arith.truncf %1 : vector<64x32xf32> to vector<64x32xbf16>
    %c0_2 = arith.constant 0 : index
    %c0_3 = arith.constant 0 : index
    %3 = vector.load %arg3[%c0_2, %c0_3] : memref<32x64xbf16, #tpu.memory_space<vmem>>, vector<32x64xbf16>
    %cst = arith.constant dense<0.000000e+00> : vector<64x64xf32>
    %4 = tpu.matmul %2, %3, %cst {dimension_numbers = #tpu.dot_dimension_numbers<[1], [0], [0], [1], [0, 0, 1, 1], [], []>} : vector<64x32xbf16>, vector<32x64xbf16>, vector<64x64xf32> -> vector<64x64xf32>
    %c0_4 = arith.constant 0 : index
    %c0_5 = arith.constant 0 : index
    %5 = vector.load %arg4[%c0_4, %c0_5] : memref<1x64xf32, #tpu.memory_space<vmem>>, vector<1x64xf32>
    %6 = vector.broadcast %5 : vector<1x64xf32> to vector<64x64xf32>
    %7 = arith.addf %4, %6 : vector<64x64xf32>
    %c0_6 = arith.constant 0 : index
    %c0_7 = arith.constant 0 : index
    %8 = vector.load %arg1[%c0_6, %c0_7] : memref<8x64xf32, #tpu.memory_space<vmem>>, vector<8x64xf32>
    %9 = vector.shape_cast %8 : vector<8x64xf32> to vector<8x1x64xf32>
    %10 = vector.shape_cast %9 : vector<8x1x64xf32> to vector<8x1x64xf32>
    %11 = vector.broadcast %10 : vector<8x1x64xf32> to vector<8x8x64xf32>
    %12 = vector.shape_cast %11 : vector<8x8x64xf32> to vector<64x64xf32>
    %13 = arith.mulf %12, %7 : vector<64x64xf32>
    %14 = arith.truncf %13 : vector<64x64xf32> to vector<64x64xbf16>
    %c0_8 = arith.constant 0 : index
    %c0_9 = arith.constant 0 : index
    %15 = vector.load %arg5[%c0_8, %c0_9] : memref<64x512xbf16, #tpu.memory_space<vmem>>, vector<64x512xbf16>
    %cst_10 = arith.constant dense<0.000000e+00> : vector<64x512xf32>
    %16 = tpu.matmul %14, %15, %cst_10 {dimension_numbers = #tpu.dot_dimension_numbers<[1], [0], [0], [1], [0, 0, 1, 1], [], []>} : vector<64x64xbf16>, vector<64x512xbf16>, vector<64x512xf32> -> vector<64x512xf32>
    %c0_11 = arith.constant 0 : index
    %c0_12 = arith.constant 0 : index
    %17 = vector.load %arg6[%c0_11, %c0_12] : memref<1x512xf32, #tpu.memory_space<vmem>>, vector<1x512xf32>
    %18 = vector.broadcast %17 : vector<1x512xf32> to vector<64x512xf32>
    %19 = arith.addf %16, %18 : vector<64x512xf32>
    %cst_13 = arith.constant 0.000000e+00 : f32
    %20 = vector.broadcast %cst_13 : f32 to vector<64x512xf32>
    %21 = arith.maximumf %19, %20 : vector<64x512xf32>
    %22 = arith.truncf %21 : vector<64x512xf32> to vector<64x512xbf16>
    %c0_14 = arith.constant 0 : index
    %c0_15 = arith.constant 0 : index
    %23 = vector.load %arg7[%c0_14, %c0_15] : memref<512x128xbf16, #tpu.memory_space<vmem>>, vector<512x128xbf16>
    %cst_16 = arith.constant dense<0.000000e+00> : vector<64x128xf32>
    %24 = tpu.matmul %22, %23, %cst_16 {dimension_numbers = #tpu.dot_dimension_numbers<[1], [0], [0], [1], [0, 0, 1, 1], [], []>} : vector<64x512xbf16>, vector<512x128xbf16>, vector<64x128xf32> -> vector<64x128xf32>
    %c0_17 = arith.constant 0 : index
    %c0_18 = arith.constant 0 : index
    %25 = vector.load %arg8[%c0_17, %c0_18] : memref<1x128xf32, #tpu.memory_space<vmem>>, vector<1x128xf32>
    %26 = vector.broadcast %25 : vector<1x128xf32> to vector<64x128xf32>
    %27 = arith.addf %24, %26 : vector<64x128xf32>
    %28 = vector.shape_cast %27 : vector<64x128xf32> to vector<8x8x128xf32>
    %cst_19 = arith.constant dense<0xFF800000> : vector<8x128xf32>
    %29 = vector.multi_reduction <maximumf>, %28, %cst_19 [1] : vector<8x8x128xf32> to vector<8x128xf32>
    %30 = vector.shape_cast %29 : vector<8x128xf32> to vector<8x1x128xf32>
    %31 = vector.broadcast %30 : vector<8x1x128xf32> to vector<8x8x128xf32>
    %32 = arith.subf %28, %31 : vector<8x8x128xf32>
    %33 = math.exp %32 : vector<8x8x128xf32>
    %cst_20 = arith.constant dense<0.000000e+00> : vector<8x128xf32>
    %34 = vector.multi_reduction <add>, %33, %cst_20 [1] : vector<8x8x128xf32> to vector<8x128xf32>
    %35 = vector.shape_cast %34 : vector<8x128xf32> to vector<8x1x128xf32>
    %36 = tpu.reciprocal %35 : vector<8x1x128xf32> -> vector<8x1x128xf32>
    %37 = vector.broadcast %36 : vector<8x1x128xf32> to vector<8x8x128xf32>
    %38 = arith.mulf %33, %37 : vector<8x8x128xf32>
    %39 = vector.extract_strided_slice %38 {offsets = [0, 0, 0], sizes = [8, 8, 1], strides = [1, 1, 1]} : vector<8x8x128xf32> to vector<8x8x1xf32>
    %40 = vector.broadcast %39 : vector<8x8x1xf32> to vector<8x8x32xf32>
    %41 = arith.mulf %40, %0 : vector<8x8x32xf32>
    %cst_21 = arith.constant dense<0.000000e+00> : vector<8x32xf32>
    %42 = vector.multi_reduction <add>, %41, %cst_21 [1] : vector<8x8x32xf32> to vector<8x32xf32>
    %43 = vector.extract_strided_slice %38 {offsets = [0, 0, 1], sizes = [8, 8, 1], strides = [1, 1, 1]} : vector<8x8x128xf32> to vector<8x8x1xf32>
    %44 = vector.broadcast %43 : vector<8x8x1xf32> to vector<8x8x32xf32>
    %45 = arith.mulf %44, %0 : vector<8x8x32xf32>
    %cst_22 = arith.constant dense<0.000000e+00> : vector<8x32xf32>
    %46 = vector.multi_reduction <add>, %45, %cst_22 [1] : vector<8x8x32xf32> to vector<8x32xf32>
    %47 = tpu.concatenate %42, %46 in 1 : vector<8x32xf32>, vector<8x32xf32> -> vector<8x64xf32>
    %cst_23 = arith.constant 0.000000e+00 : f32
    %48 = vector.broadcast %cst_23 : f32 to vector<8x64xf32>
    %49 = tpu.concatenate %47, %48 in 1 : vector<8x64xf32>, vector<8x64xf32> -> vector<8x128xf32>
    %c0_24 = arith.constant 0 : index
    %c0_25 = arith.constant 0 : index
    %50 = vector.load %arg9[%c0_24, %c0_25] : memref<8x128xf32, #tpu.memory_space<vmem>>, vector<8x128xf32>
    tpu.vector_store %arg9[%c0_24, %c0_25], %49 {strides = array<i32>} : memref<8x128xf32, #tpu.memory_space<vmem>>, vector<8x128xf32>,
    return
  }
  func.func @transform_0(%arg0: i32) -> (i32, i32) {
    %c0_i32 = arith.constant 0 : i32
    %c0_i32_0 = arith.constant 0 : i32
    return %arg0, %c0_i32 : i32, i32
  }
  func.func @transform_1(%arg0: i32) -> (i32, i32, i32) {
    %c0_i32 = arith.constant 0 : i32
    %c0_i32_0 = arith.constant 0 : i32
    %c0_i32_1 = arith.constant 0 : i32
    return %arg0, %c0_i32, %c0_i32_0 : i32, i32, i32
  }
  func.func @transform_2(%arg0: i32) -> (i32, i32) {
    %c0_i32 = arith.constant 0 : i32
    %c0_i32_0 = arith.constant 0 : i32
    %c0_i32_1 = arith.constant 0 : i32
    return %c0_i32, %c0_i32_0 : i32, i32
  }
  func.func @transform_3(%arg0: i32) -> (i32, i32) {
    %c0_i32 = arith.constant 0 : i32
    %c0_i32_0 = arith.constant 0 : i32
    %c0_i32_1 = arith.constant 0 : i32
    return %c0_i32, %c0_i32_0 : i32, i32
  }
  func.func @transform_4(%arg0: i32) -> (i32, i32) {
    %c0_i32 = arith.constant 0 : i32
    %c0_i32_0 = arith.constant 0 : i32
    %c0_i32_1 = arith.constant 0 : i32
    return %c0_i32, %c0_i32_0 : i32, i32
  }
  func.func @transform_5(%arg0: i32) -> (i32, i32) {
    %c0_i32 = arith.constant 0 : i32
    %c0_i32_0 = arith.constant 0 : i32
    %c0_i32_1 = arith.constant 0 : i32
    return %c0_i32, %c0_i32_0 : i32, i32
  }
  func.func @transform_6(%arg0: i32) -> (i32, i32) {
    %c0_i32 = arith.constant 0 : i32
    %c0_i32_0 = arith.constant 0 : i32
    %c0_i32_1 = arith.constant 0 : i32
    return %c0_i32, %c0_i32_0 : i32, i32
  }
  func.func @transform_7(%arg0: i32) -> (i32, i32) {
    %c0_i32 = arith.constant 0 : i32
    %c0_i32_0 = arith.constant 0 : i32
    %c0_i32_1 = arith.constant 0 : i32
    return %c0_i32, %c0_i32_0 : i32, i32
  }
  func.func @transform_8(%arg0: i32) -> (i32, i32) {
    %c0_i32 = arith.constant 0 : i32
    %c0_i32_0 = arith.constant 0 : i32
    return %arg0, %c0_i32 : i32, i32
  }
}

</mosaic_0001>

<bundles_post_ra>
// kernel: tpu_custom_call.1
= control target key start
LH: loop header
LB: loop body
LE: loop exit
PB: predicated region body
PF: predicated region fallthrough
CT: control target
= control target key end

     0   :  { %13 = vsyncpa [#allocation3], 0  ;;  %s2181_s0 = inlined_call_operand.hbm [shape: f32[8,64], index: 0, kind: input, shape index: {}]   ;;  %s2182_s1 = inlined_call_operand.hbm [shape: f32[8,8,32], index: 1, kind: input, shape index: {}]   ;;  %s2183_s2 = inlined_call_operand.hbm [shape: bf16[32,64], index: 2, kind: input, shape index: {}]   ;;  %s2184_s3 = inlined_call_operand.vmem [shape: f32[1,64], index: 3, kind: input, shape index: {}]   ;;  %s2185_s4 = inlined_call_operand.hbm [shape: bf16[64,512], index: 4, kind: input, shape index: {}]   ;;  %s2186_s5 = inlined_call_operand.vmem [shape: f32[1,512], index: 5, kind: input, shape index: {}]   ;;  %s2187_s6 = inlined_call_operand.hbm [shape: bf16[512,128], index: 6, kind: input, shape index: {}]   ;;  %s2188_s7 = inlined_call_operand.vmem [shape: f32[1,128], index: 7, kind: input, shape index: {}]   ;;  %s2189_s8 = inlined_call_operand.hbm [shape: f32[8,128], index: 8, kind: output, shape index: {}]  }
   0x1   :  { %14 = vsyncpa [#allocation6], 0 }
   0x2   :  { %15 = vsyncpa [#allocation9], 0 }
   0x3   :  { %16 = vsyncpa [#allocation4], 0  ;;  %s1850_s27 = smov [#allocation5]   ;;  %s1710_s9 = scalar_lea.hbm %s2182_s1, 1024 }
   0x4   :  { %s32_s28 = sshll.u32 %s1850_s27, 4  ;;  %p1711_p0 = scmp.ne.s32.totalorder %s2182_s1, %s1710_s9  ;;  %s33_s28 = int_to_ptr.vmem [resolvable:$true] %s32_s28 }
   0x5   :  { %p1714_p1 = scmp.lt.u32.totalorder %s1710_s9, %s2182_s1 }
   0x7   :  { %p1716_p2 = pnand %p1714_p1, %p1711_p0 }
   0x9   :  { %1719 = shalt.err (!%p1716_p2)
}
   0xa   :  { %s1720_s14 = scalar_lea.vmem %s33_s28, 1024  ;;  %p1725_p4 = scmp.lt.s32.totalorder %s33_s28, %s33_s28 }
   0xb   :  { %p1721_p3 = scmp.ne.s32.totalorder %s33_s28, %s1720_s14  ;;  %p1726_p5 = scmp.lt.s32.totalorder %s1720_s14, %s1720_s14 }
   0xd   :  { %p1727_p6 = por %p1726_p5, %p1725_p4 }
   0xf   :  { %p1728_p7 = pnand %p1727_p6, %p1721_p3 }
  0x11   :  { %1731 = shalt.err (!%p1728_p7)
}
  0x12   :  { %s1851_s15 = smov 128   ;;  %s1852_s16 = smov 8  }
  0x13   :  { %38 = dma.hbm_to_vmem [thread:$0]  %s2182_s1, 1024, %s33_s28, [#allocation6], %s1851_s15, %s1851_s15, %s1852_s16  }
  0x14   :  { %s1853_s19 = smov [#allocation8]   ;;  %s1732_s23 = scalar_lea.hbm %s2185_s4, 2048 }
  0x15   :  { %s58_s20 = sshll.u32 %s1853_s19, 4  ;;  %p1733_p8 = scmp.ne.s32.totalorder %s2185_s4, %s1732_s23  ;;  %s59_s20 = int_to_ptr.vmem [resolvable:$true] %s58_s20 }
  0x16   :  { %p1736_p9 = scmp.lt.u32.totalorder %s1732_s23, %s2185_s4 }
  0x18   :  { %p1738_p10 = pnand %p1736_p9, %p1733_p8 }
  0x1a   :  { %1741 = shalt.err (!%p1738_p10)
}
  0x1b   :  { %s1742_s29 = scalar_lea.vmem %s59_s20, 2048  ;;  %p1747_p12 = scmp.lt.s32.totalorder %s59_s20, %s59_s20 }
  0x1c   :  { %p1743_p11 = scmp.ne.s32.totalorder %s59_s20, %s1742_s29  ;;  %p1748_p13 = scmp.lt.s32.totalorder %s1742_s29, %s1742_s29 }
  0x1e   :  { %p1749_p0 = por %p1748_p13, %p1747_p12 }
  0x20   :  { %p1750_p1 = pnand %p1749_p0, %p1743_p11 }
  0x22   :  { %1753 = shalt.err (!%p1750_p1)
}
  0x23   :  { %s1854_s1 = smov 256   ;;  %s1855_s28 = smov 16  }
  0x24   :  { %64 = dma.hbm_to_vmem [thread:$0]  %s2185_s4, 2048, %s59_s20, [#allocation9], %s1854_s1, %s1854_s1, %s1855_s28  }
  0x25   :  { %s1856_s10 = smov [#allocation2]   ;;  %s1857_s12 = smov [#allocation7]  }
  0x26   :  { %s23_s11 = sshll.u32 %s1856_s10, 4  ;;  %s44_s13 = sshll.u32 %s1857_s12, 4  ;;  %s24_s11 = int_to_ptr.vmem [resolvable:$true] %s23_s11  ;;  %s1935_s13 = int_to_ptr.vmem [resolvable:$true] %s44_s13 }
  0x27   :  { %s1754_s16 = scalar_lea.hbm %s2181_s0, 128 }
  0x28   :  { %p1755_p2 = scmp.ne.s32.totalorder %s2181_s0, %s1754_s16  ;;  %p1758_p3 = scmp.lt.u32.totalorder %s1754_s16, %s2181_s0 }
  0x2a   :  { %p1760_p4 = pnand %p1758_p3, %p1755_p2 }
  0x2c   :  { %1763 = shalt.err (!%p1760_p4)
}
  0x2d   :  { %s1764_s4 = scalar_lea.vmem %s24_s11, 128  ;;  %p1769_p6 = scmp.lt.s32.totalorder %s24_s11, %s24_s11 }
  0x2e   :  { %p1765_p5 = scmp.ne.s32.totalorder %s24_s11, %s1764_s4  ;;  %p1770_p7 = scmp.lt.s32.totalorder %s1764_s4, %s1764_s4 }
  0x30   :  { %p1771_p8 = por %p1770_p7, %p1769_p6 }
  0x32   :  { %p1772_p9 = pnand %p1771_p8, %p1765_p5 }
  0x34   :  { %1775 = shalt.err (!%p1772_p9)
}
  0x35   :  { %26 = dma.hbm_to_vmem [thread:$0]  %s2181_s0, 128, %s24_s11, [#allocation3]  }
  0x36   :  { %s1776_s25 = scalar_lea.hbm %s2183_s2, 256 }
  0x37   :  { %p1777_p10 = scmp.ne.s32.totalorder %s2183_s2, %s1776_s25  ;;  %p1780_p11 = scmp.lt.u32.totalorder %s1776_s25, %s2183_s2 }
  0x39   :  { %p1782_p12 = pnand %p1780_p11, %p1777_p10 }
  0x3b   :  { %1785 = shalt.err (!%p1782_p12)
}
  0x3c   :  { %s1786_s28 = scalar_lea.vmem %s1935_s13, 256  ;;  %p1791_p0 = scmp.lt.s32.totalorder %s1935_s13, %s1935_s13 }
  0x3d   :  { %p1787_p13 = scmp.ne.s32.totalorder %s1935_s13, %s1786_s28  ;;  %p1792_p1 = scmp.lt.s32.totalorder %s1786_s28, %s1786_s28 }
  0x3f   :  { %p1793_p2 = por %p1792_p1, %p1791_p0 }
  0x41   :  { %p1794_p3 = pnand %p1793_p2, %p1787_p13 }
  0x43   :  { %1797 = shalt.err (!%p1794_p3)
}
  0x44   :  { %s1858_s0 = smov 64   ;;  %s1859_s30 = smov 4  }
  0x45   :  { %50 = dma.hbm_to_vmem [thread:$0]  %s2183_s2, 256, %s1935_s13, [#allocation6], %s1858_s0, %s1858_s0, %s1859_s30  }
  0x46   :  { %s1860_s11 = smov [#allocation10]   ;;  %s1798_s16 = scalar_lea.hbm %s2187_s6, 4096 }
  0x47   :  { %s72_s12 = sshll.u32 %s1860_s11, 4  ;;  %p1799_p4 = scmp.ne.s32.totalorder %s2187_s6, %s1798_s16  ;;  %s73_s12 = int_to_ptr.vmem [resolvable:$true] %s72_s12 }
  0x48   :  { %p1802_p5 = scmp.lt.u32.totalorder %s1798_s16, %s2187_s6 }
  0x4a   :  { %p1804_p6 = pnand %p1802_p5, %p1799_p4 }
  0x4c   :  { %1807 = shalt.err (!%p1804_p6)
}
  0x4d   :  { %s1808_s4 = scalar_lea.vmem %s73_s12, 4096  ;;  %p1813_p8 = scmp.lt.s32.totalorder %s73_s12, %s73_s12 }
  0x4e   :  { %p1809_p7 = scmp.ne.s32.totalorder %s73_s12, %s1808_s4  ;;  %p1814_p9 = scmp.lt.s32.totalorder %s1808_s4, %s1808_s4 }
  0x50   :  { %p1815_p10 = por %p1814_p9, %p1813_p8 }
  0x52   :  { %p1816_p11 = pnand %p1815_p10, %p1809_p7 }
  0x54   :  { %1819 = shalt.err (!%p1816_p11)
}
  0x55   :  { %78 = dma.hbm_to_vmem [thread:$0]  %s2187_s6, 4096, %s73_s12, [#allocation9], %s1858_s0, %s1858_s0, %s1859_s30  }
  0x56   :  { %1842 = dma.done.wait [#allocation3], 128  }
  0x57   :  { %1843 = vsyncadd [#allocation3], 4294967168 }
  0x58   :  { %1844 = dma.done.wait [#allocation6], 1280  }
  0x59   :  { %1845 = vsyncadd [#allocation6], 4294966016 }
  0x5a   :  { %1846 = dma.done.wait [#allocation9], 6144  }
  0x5b   :  { %1847 = vsyncadd [#allocation9], 4294961152  ;;  %v1611_v0 = vld [vmem:[#allocation7] sm:$0xff]   ;;  %v1612_v1 = vld [vmem:[#allocation7 + $0x8] sm:$0xff]   ;;  %vm132_vm0 = vcmask 261120   ;;  %v1861_v30 = vmov 0   ;;  %v216_v35 = vlaneseq }
  0x5c   :  { %1578 = vmatprep.subr.bf16.mxu0 %v1611_v0  ;;  %v97_v2 = vld [vmem:[#allocation5] sm:$0xff]  ;;  %v98_v3 = vld [vmem:[#allocation5 + $0x8] sm:$0xff]  ;;  %v99_v5 = vld [vmem:[#allocation5 + $0x10] sm:$0xff]  ;;  %476 = vmatprep.mubr.bf16.mxu1 %v1861_v30  ;;  %v1862_v33 = vmov 1966171168   ;;  %vm431_vm1 = vcmask 523264  }
  0x5d   :  { %1579 = vmatpush3.bf16.msra.mxu0 %v1611_v0  ;;  %v105_v4 = vpack.c.bf16 %v98_v3, %v97_v2  ;;  %v100_v6 = vld [vmem:[#allocation5 + $0x18] sm:$0xff]  ;;  %v101_v7 = vld [vmem:[#allocation5 + $0x20] sm:$0xff]  ;;  %v102_v8 = vld [vmem:[#allocation5 + $0x28] sm:$0xff]  ;;  %v214_v34 = vunpack.c.l.s4 %v1862_v33  ;;  %v1984_v37 = vshrl.u32 %v216_v35, 7  ;;  %vm1375_vm2 = vcmask 1041409   ;;  %s1865_s24 = smov [#allocation11]  }
  0x5e   :  { %1580 = vmatprep.subr.bf16.mxu0 %v1612_v1  ;;  %v1613_v9 = vld [vmem:[#allocation8 + $0x4] ss:$16 sps:$4 sm:$0xff]   ;;  %v106_v10 = vpack.c.bf16 %v100_v6, %v99_v5  ;;  %v1615_v11 = vld [vmem:[#allocation8 + $0x8] ss:$16 sps:$4 sm:$0xff]   ;;  %v1617_v12 = vld [vmem:[#allocation8 + $0xc] ss:$16 sps:$4 sm:$0xff]   ;;  %v107_v13 = vpack.c.bf16 %v102_v8, %v101_v7 }
  0x5f   :  { %1582 = vmatprep.mubr.msk.bf16.mxu0 %vm132_vm0, %v105_v4  ;;  %444 = vmatprep.subr.bf16.mxu1 %v1613_v9  ;;  %v1618_v14 = vld [vmem:[#allocation8] ss:$16 sps:$4 sm:$0xff]   ;;  %v1619_v15 = vld [vmem:[#allocation8 + $0x24] ss:$16 sps:$4 sm:$0xff]   ;;  %v104_v17 = vld [vmem:[#allocation5 + $0x38] sm:$0xff]  ;;  %v215_v36 = vunpack.c.0.s8 %v214_v34  ;;  %v1988_v47 = vsub.s32 0, %v1984_v37 }
  0x60   :  { %v103_v16 = vld [vmem:[#allocation5 + $0x30] sm:$0xff]  ;;  %445 = vmatpush1.bf16.msra.mxu1 %v1618_v14  ;;  %v1621_v18 = vld [vmem:[#allocation8 + $0x28] ss:$16 sps:$4 sm:$0xff]   ;;  %v1623_v19 = vld [vmem:[#allocation8 + $0x2c] ss:$16 sps:$4 sm:$0xff]   ;;  %vm1377_vm3 = vcmask 1042434  }
  0x61   :  { %1581 = vmatpush3.bf16.msra.mxu0 %v1612_v1  ;;  %v1624_v20 = vld [vmem:[#allocation8 + $0x20] ss:$16 sps:$4 sm:$0xff]   ;;  %446 = vmatprep.subr.bf16.mxu1 %v1619_v15  ;;  %v108_v21 = vpack.c.bf16 %v104_v17, %v103_v16  ;;  %v1625_v22 = vld [vmem:[#allocation8 + $0x44] ss:$16 sps:$4 sm:$0xff]   ;;  %v1629_v23 = vld [vmem:[#allocation8 + $0x4c] ss:$16 sps:$4 sm:$0xff]   ;;  %v218_v38 = vsub.s32 %v215_v36, %v1984_v37 }
  0x62   :  { %517 = vmatprep.subr.bf16.mxu0 %v1617_v12  ;;  %v1627_v24 = vld [vmem:[#allocation8 + $0x48] ss:$16 sps:$4 sm:$0xff]   ;;  %v1630_v25 = vld [vmem:[#allocation8 + $0x40] ss:$16 sps:$4 sm:$0xff]   ;;  %v1631_v26 = vld [vmem:[#allocation8 + $0x64] ss:$16 sps:$4 sm:$0xff]  }
  0x63   :  { %v1635_v27 = vld [vmem:[#allocation8 + $0x6c] ss:$16 sps:$4 sm:$0xff]   ;;  %v1633_v28 = vld [vmem:[#allocation8 + $0x68] ss:$16 sps:$4 sm:$0xff]   ;;  %v1636_v29 = vld [vmem:[#allocation8 + $0x60] ss:$16 sps:$4 sm:$0xff]  }
  0x64   :  { %1583 = vmatmul.mubr.msk.bf16.vlgmr.msra.gmra.mrb[0].mxu0 %vm132_vm0, %v106_v10  ;;  %447 = vmatpush1.bf16.msra.mxu1 %v1624_v20  ;;  %v1638_v31 = vld [vmem:[#allocation10 + $0x40] sm:$0xff]   ;;  %v210_v39 = vld [vmem:[#allocation2] sm:$0xff]  ;;  %v1647_v36 = vld [vmem:[#allocation10 + $0x10] sm:$0xff]   ;;  %vm1379_vm4 = vcmask 1043459   ;;  %vm1381_vm5 = vcmask 1044484   ;;  %vm1383_vm6 = vcmask 1045509  }
  0x65   :  { %1586 = vmatprep.mubr.msk.bf16.mxu0 %vm132_vm0, %v107_v13  ;;  %518 = vmatpush1.bf16.msra.mxu0 %v1615_v11  ;;  %v1640_v32 = vld [vmem:[#allocation10 + $0xc0] sm:$0xff]   ;;  %v219_v40 = vrot.slane %v210_v39, %v218_v38  ;;  %v212_v42 = vcombine.high %v210_v39, %v210_v39  ;;  %v1428_v50 = vld [vmem:[%s2184_s3] ss:$0 sm:$0xff]  ;;  %v1650_v39 = vld [vmem:[#allocation10 + $0x58] sm:$0xff]   ;;  %vm1385_vm7 = vcmask 1046534   ;;  %vm1387_vm8 = vcmask 1047559  }
  0x66   :  { %519 = vmatprep.subr.bf16.mxu0 %v1623_v19  ;;  %448 = vmatprep.subr.bf16.mxu1 %v1625_v22  ;;  %v1639_v12 = vld [vmem:[#allocation10] sm:$0xff]   ;;  %v1642_v17 = vld [vmem:[#allocation10 + $0x48] sm:$0xff]   ;;  %s1417_s25 = sshll.u32 %s1865_s24, 4  ;;  %s1418_s25 = int_to_ptr.vmem [resolvable:$true] %s1417_s25 }
  0x67   :  { %v227_v41 = vcombine.high %v219_v40, %v219_v40  ;;  %v235_v43 = vrot.slane %v219_v40, %v218_v38  ;;  %v226_v45 = vrot.slane %v212_v42, %v218_v38  ;;  %v1641_v13 = vld [vmem:[#allocation10 + $0x80] sm:$0xff]   ;;  %v1652_v40 = vld [vmem:[#allocation10 + $0xd8] sm:$0xff]   ;;  %s1820_s26 = scalar_lea.vmem %s1418_s25, 128  ;;  %p1825_p13 = scmp.lt.s32.totalorder %s1418_s25, %s1418_s25 }
  0x68   :  { %449 = vmatpush1.bf16.msra.mxu1 %v1630_v25  ;;  %v1653_v42 = vld [vmem:[#allocation10 + $0x98] sm:$0xff]   ;;  %p1821_p12 = scmp.ne.s32.totalorder %s1418_s25, %s1820_s26  ;;  %p1826_p0 = scmp.lt.s32.totalorder %s1820_s26, %s1820_s26 }
  0x69   :  { %520 = vmatpush1.bf16.msra.mxu0 %v1621_v18  ;;  %450 = vmatprep.subr.bf16.mxu1 %v1631_v26  ;;  %v249_v44 = vrot.slane %v227_v41, %v218_v38  ;;  %v257_v46 = vcombine.high %v235_v43, %v235_v43  ;;  %v228_v49 = vcombine.high %v226_v45, %v226_v45  ;;  %v1644_v18 = vld [vmem:[#allocation10 + $0xc8] sm:$0xff]   ;;  %v1651_v41 = vld [vmem:[#allocation10 + $0x18] sm:$0xff]  }
  0x6a   :  { %521 = vmatprep.subr.bf16.mxu0 %v1629_v23  ;;  %v242_v51 = vrot.slane %v226_v45, %v218_v38  ;;  %v264_v59 = vrot.slane %v235_v43, %v1988_v47  ;;  %v1654_v43 = vld [vmem:[#allocation10 + $0x60] sm:$0xff]   ;;  %p1827_p1 = por %p1826_p0, %p1825_p13 }
  0x6b   :  { %v259_v48 = vcombine.high %v249_v44, %v249_v44  ;;  %v272_v54 = vrot.slane %v257_v46, %v1988_v47  ;;  %v256_v57 = vrot.slane %v228_v49, %v218_v38  ;;  %v268_v61 = vrot.slane %v249_v44, %v1988_v47  ;;  %v1649_v38 = vld [vmem:[#allocation10 + $0x90] sm:$0xff]   ;;  %v1656_v44 = vld [vmem:[#allocation10 + $0xe0] sm:$0xff]   ;;  %v1660_v49 = vld [vmem:[#allocation10 + $0xe8] sm:$0xff]  }
  0x6c   :  { %1587 = vmatmul.mubr.msk.bf16.gmra.mrb[4].mxu0 %vm132_vm0, %v108_v21  ;;  %451 = vmatpush1.bf16.msra.mxu1 %v1636_v29  ;;  %v258_v0 = vcombine.high %v242_v51, %v242_v51  ;;  %v280_v11 = vrot.slane %v242_v51, %v1988_v47  ;;  %v1655_v45 = vld [vmem:[#allocation10 + $0x20] sm:$0xff]   ;;  %v1661_v51 = vld [vmem:[#allocation10 + $0xa8] sm:$0xff]   ;;  %p1828_p2 = pnand %p1827_p1, %p1821_p12 }
  0x6d   :  { %522 = vmatpush1.bf16.msra.mxu0 %v1627_v24  ;;  %549 = vmatprep.mubr.bf16.mxu0 %v1861_v30  ;;  %v276_v56 = vrot.slane %v259_v48, %v1988_v47  ;;  %v260_v4 = vcombine.high %v256_v57, %v256_v57  ;;  %v284_v21 = vrot.slane %v256_v57, %v1988_v47  ;;  %v1657_v46 = vld [vmem:[#allocation10 + $0xa0] sm:$0xff]   ;;  %v1658_v48 = vld [vmem:[#allocation10 + $0x68] sm:$0xff]   ;;  %v1668_v57 = vld [vmem:[#allocation10 + $0xf8] sm:$0xff]  }
  0x6e   :  { %523 = vmatprep.subr.bf16.mxu0 %v1635_v27  ;;  %1498 = vmatprep.subr.bf16.mxu1 %v1638_v31  ;;  %v288_v8 = vrot.slane %v258_v0, %v1988_v47  ;;  %v1643_v27 = vld [vmem:[#allocation10 + $0x8] sm:$0xff]   ;;  %v1646_v31 = vld [vmem:[#allocation10 + $0x50] sm:$0xff]  }
  0x6f   :  { %v292_v16 = vrot.slane %v260_v4, %v1988_v47 }
  0x71   :  { %524 = vmatpush1.bf16.msra.mxu0 %v1633_v28  ;;  %v1645_v28 = vld [vmem:[#allocation10 + $0x88] sm:$0xff]  }
  0x72   :  { %1538 = vmatprep.subr.bf16.mxu0 %v1640_v32  ;;  %v1648_v32 = vld [vmem:[#allocation10 + $0xd0] sm:$0xff]  }
 0x137   :  { %v1584_v52 = vpop.f32.mrb[0].mxu0 }
 0x138   :  { %v188_v53 = vadd.f32 %v1584_v52, %v1428_v50  ;;  %v179_v55 = vpop.f32.mrb[1].mxu0  ;;  %v1662_v52 = vld [vmem:[#allocation10 + $0x70] sm:$0xff]  }
 0x139   :  { %v180_v58 = vadd.f32 %v1428_v50, %v179_v55  ;;  %v1585_v60 = vpop.f32.mrb[2].mxu0  ;;  %v1665_v55 = vld [vmem:[#allocation10 + $0xb0] sm:$0xff]  }
 0x13a   :  { %v191_v62 = vadd.f32 %v1585_v60, %v1428_v50  ;;  %v182_v63 = vpop.f32.mrb[3].mxu0  ;;  %v303_v2 = vmul.f32 %v272_v54, %v188_v53  ;;  %v1664_v53 = vld [vmem:[#allocation10 + $0xf0] sm:$0xff]   ;;  %v341_v60 = vsub.s32 2, %v1984_v37 }
 0x13b   :  { %v183_v1 = vadd.f32 %v1428_v50, %v182_v63  ;;  %v301_v5 = vmul.f32 %v264_v59, %v180_v58  ;;  %v1663_v54 = vld [vmem:[#allocation10 + $0x30] sm:$0xff]   ;;  %v1667_v58 = vld [vmem:[#allocation10 + $0x38] sm:$0xff]   ;;  %v345_v63 = vsub.s32 3, %v1984_v37 }
 0x13c   :  { %v304_v3 = vmul.f32 %v276_v56, %v191_v62  ;;  %v1666_v56 = vld [vmem:[#allocation10 + $0x78] sm:$0xff]   ;;  %v337_v62 = vsub.s32 1, %v1984_v37 }
 0x13d   :  { %v302_v6 = vmul.f32 %v268_v61, %v183_v1  ;;  %v1669_v59 = vld [vmem:[#allocation10 + $0xb8] sm:$0xff]   ;;  %v329_v61 = vld [vmem:[%s2186_s5] sm:$0xf] }
 0x13e   :  { %v310_v7 = vpack.c.bf16 %v304_v3, %v303_v2  ;;  %v2022_v0 = vrot.slane %v329_v61, %v1988_v47  ;;  %v2024_v1 = vrot.slane %v329_v61, %v341_v60  ;;  %v2026_v2 = vrot.slane %v329_v61, %v337_v62 }
 0x13f   :  { %v309_v9 = vpack.c.bf16 %v302_v6, %v301_v5  ;;  %v1588_v10 = vpop.f32.mrb[4].mxu0  ;;  %v2028_v3 = vrot.slane %v329_v61, %v345_v63 }
 0x140   :  { %v204_v14 = vadd.f32 %v1588_v10, %v1428_v50  ;;  %v195_v15 = vpop.f32.mrb[5].mxu0 }
 0x141   :  { %1451 = vmatmul.mubr.msk.bf16.vlgmr.msra.gmra.mrb[0].mxu1 %vm431_vm1, %v309_v9  ;;  %1455 = vmatmul.mubr.msk.bf16.vlgmr.msra.gmra.mrb[8].mxu0 %vm431_vm1, %v309_v9  ;;  %v196_v19 = vadd.f32 %v1428_v50, %v195_v15  ;;  %v1589_v20 = vpop.f32.mrb[6].mxu0 }
 0x142   :  { %v307_v22 = vmul.f32 %v288_v8, %v204_v14  ;;  %v207_v23 = vadd.f32 %v1589_v20, %v1428_v50  ;;  %v198_v24 = vpop.f32.mrb[7].mxu0  ;;  %486 = vmatprep.mubr.bf16.mxu1 %v1861_v30  ;;  %559 = vmatprep.mubr.bf16.mxu0 %v1861_v30 }
 0x143   :  { %v305_v25 = vmul.f32 %v280_v11, %v196_v19  ;;  %v199_v26 = vadd.f32 %v1428_v50, %v198_v24  ;;  %1499 = vmatpush3.bf16.msra.mxu1 %v1639_v12  ;;  %1539 = vmatpush3.bf16.msra.mxu0 %v1641_v13  ;;  %v1659_v50 = vld [vmem:[#allocation10 + $0x28] sm:$0xff]  }
 0x144   :  { %v308_v29 = vmul.f32 %v292_v16, %v207_v23  ;;  %1500 = vmatprep.subr.bf16.mxu1 %v1642_v17  ;;  %1540 = vmatprep.subr.bf16.mxu0 %v1644_v18 }
 0x145   :  { %v306_v33 = vmul.f32 %v284_v21, %v199_v26 }
 0x146   :  { %v312_v34 = vpack.c.bf16 %v308_v29, %v307_v22 }
 0x147   :  { %v311_v35 = vpack.c.bf16 %v306_v33, %v305_v25  ;;  %1501 = vmatpush3.bf16.msra.mxu1 %v1643_v27  ;;  %1541 = vmatpush3.bf16.msra.mxu0 %v1645_v28 }
 0x148   :  { %1502 = vmatprep.subr.bf16.mxu1 %v1646_v31  ;;  %1542 = vmatprep.subr.bf16.mxu0 %v1648_v32 }
 0x149   :  { %1452 = vmatmul.mubr.msk.bf16.gmra.mrb[4].mxu1 %vm431_vm1, %v310_v7  ;;  %1456 = vmatmul.mubr.msk.bf16.gmra.mrb[12].mxu0 %vm431_vm1, %v310_v7 }
 0x14a   :  { %496 = vmatprep.mubr.bf16.mxu1 %v1861_v30  ;;  %569 = vmatprep.mubr.bf16.mxu0 %v1861_v30 }
 0x14b   :  { %1503 = vmatpush3.bf16.msra.mxu1 %v1647_v36  ;;  %1543 = vmatpush3.bf16.msra.mxu0 %v1649_v38 }
 0x14c   :  { %1504 = vmatprep.subr.bf16.mxu1 %v1650_v39  ;;  %1544 = vmatprep.subr.bf16.mxu0 %v1652_v40 }
 0x14f   :  { %1505 = vmatpush3.bf16.msra.mxu1 %v1651_v41  ;;  %1545 = vmatpush3.bf16.msra.mxu0 %v1653_v42 }
 0x150   :  { %1506 = vmatprep.subr.bf16.mxu1 %v1654_v43  ;;  %1546 = vmatprep.subr.bf16.mxu0 %v1656_v44 }
 0x151   :  { %1453 = vmatmul.mubr.msk.bf16.gmra.mrb[8].mxu1 %vm431_vm1, %v311_v35  ;;  %1457 = vmatmul.mubr.msk.bf16.gmra.mrb[16].mxu0 %vm431_vm1, %v311_v35 }
 0x152   :  { %506 = vmatprep.mubr.bf16.mxu1 %v1861_v30  ;;  %579 = vmatprep.mubr.bf16.mxu0 %v1861_v30 }
 0x153   :  { %1507 = vmatpush3.bf16.msra.mxu1 %v1655_v45  ;;  %1547 = vmatpush3.bf16.msra.mxu0 %v1657_v46 }
 0x154   :  { %1508 = vmatprep.subr.bf16.mxu1 %v1658_v48  ;;  %1548 = vmatprep.subr.bf16.mxu0 %v1660_v49 }
 0x157   :  { %1509 = vmatpush3.bf16.msra.mxu1 %v1659_v50  ;;  %1549 = vmatpush3.bf16.msra.mxu0 %v1661_v51 }
 0x158   :  { %1510 = vmatprep.subr.bf16.mxu1 %v1662_v52  ;;  %1550 = vmatprep.subr.bf16.mxu0 %v1664_v53 }
 0x159   :  { %1454 = vmatmul.mubr.msk.bf16.gmra.mrb[12].mxu1 %vm431_vm1, %v312_v34  ;;  %1458 = vmatmul.mubr.msk.bf16.gmra.mrb[20].mxu0 %vm431_vm1, %v312_v34 }
 0x15b   :  { %1511 = vmatpush3.bf16.msra.mxu1 %v1663_v54  ;;  %1551 = vmatpush3.bf16.msra.mxu0 %v1665_v55 }
 0x15c   :  { %1512 = vmatprep.subr.bf16.mxu1 %v1666_v56  ;;  %1552 = vmatprep.subr.bf16.mxu0 %v1668_v57 }
 0x15f   :  { %1513 = vmatpush3.bf16.msra.mxu1 %v1667_v58  ;;  %1553 = vmatpush3.bf16.msra.mxu0 %v1669_v59 }
 0x214   :  { %v478_v4 = vpop.f32.mrb[0].mxu1  ;;  %v551_v5 = vpop.f32.mrb[8].mxu0 }
 0x215   :  { %v479_v6 = vadd.f32 %v478_v4, %v2022_v0  ;;  %v552_v7 = vadd.f32 %v551_v5, %v2024_v1  ;;  %v480_v8 = vpop.f32.mrb[1].mxu1  ;;  %v553_v9 = vpop.f32.mrb[9].mxu0 }
 0x216   :  { %v481_v10 = vadd.f32 %v480_v8, %v2026_v2  ;;  %v554_v37 = vadd.f32 %v553_v9, %v2028_v3  ;;  %v482_v47 = vpop.f32.mrb[2].mxu1  ;;  %v555_v11 = vpop.f32.mrb[10].mxu0 }
 0x217   :  { %v483_v12 = vadd.f32 %v482_v47, %v2022_v0  ;;  %v556_v13 = vadd.f32 %v555_v11, %v2024_v1  ;;  %v484_v14 = vpop.f32.mrb[3].mxu1  ;;  %v557_v15 = vpop.f32.mrb[11].mxu0  ;;  %v590_v18 = vmax.f32 %v479_v6, 0.0  ;;  %v592_v19 = vmax.f32 %v552_v7, 0.0 }
 0x218   :  { %v485_v16 = vadd.f32 %v484_v14, %v2026_v2  ;;  %v558_v17 = vadd.f32 %v557_v15, %v2028_v3  ;;  %v591_v22 = vmax.f32 %v481_v10, 0.0  ;;  %v593_v23 = vmax.f32 %v554_v37, 0.0 }
 0x219   :  { %v594_v20 = vmax.f32 %v483_v12, 0.0  ;;  %v596_v21 = vmax.f32 %v556_v13, 0.0 }
 0x21a   :  { %v595_v24 = vmax.f32 %v485_v16, 0.0  ;;  %v597_v25 = vmax.f32 %v558_v17, 0.0 }
 0x21b   :  { %v622_v26 = vpack.c.bf16 %v594_v20, %v590_v18  ;;  %v624_v27 = vpack.c.bf16 %v596_v21, %v592_v19 }
 0x21c   :  { %v623_v28 = vpack.c.bf16 %v595_v24, %v591_v22  ;;  %v625_v29 = vpack.c.bf16 %v597_v25, %v593_v23  ;;  %v488_v31 = vpop.f32.mrb[4].mxu1  ;;  %v561_v32 = vpop.f32.mrb[12].mxu0 }
 0x21d   :  { %v489_v33 = vadd.f32 %v488_v31, %v2022_v0  ;;  %v562_v34 = vadd.f32 %v561_v32, %v2024_v1  ;;  %v490_v35 = vpop.f32.mrb[5].mxu1  ;;  %v563_v36 = vpop.f32.mrb[13].mxu0 }
 0x21e   :  { %v491_v38 = vadd.f32 %v490_v35, %v2026_v2  ;;  %v564_v39 = vadd.f32 %v563_v36, %v2028_v3  ;;  %v492_v40 = vpop.f32.mrb[6].mxu1  ;;  %v565_v41 = vpop.f32.mrb[14].mxu0  ;;  %933 = vmatprep.mubr.bf16.mxu1 %v623_v28  ;;  %998 = vmatprep.mubr.bf16.mxu0 %v625_v29 }
 0x21f   :  { %v493_v42 = vadd.f32 %v492_v40, %v2022_v0  ;;  %v566_v43 = vadd.f32 %v565_v41, %v2024_v1  ;;  %v494_v44 = vpop.f32.mrb[7].mxu1  ;;  %v567_v45 = vpop.f32.mrb[15].mxu0  ;;  %934 = vmatmul.mubr.bf16.vlgmr.msra.gmra.mrb[16].mxu1 %v622_v26  ;;  %999 = vmatmul.mubr.bf16.vlgmr.msra.gmra.mrb[24].mxu0 %v624_v27  ;;  %v598_v49 = vmax.f32 %v489_v33, 0.0  ;;  %v600_v50 = vmax.f32 %v562_v34, 0.0 }
 0x220   :  { %v495_v46 = vadd.f32 %v494_v44, %v2026_v2  ;;  %v568_v48 = vadd.f32 %v567_v45, %v2028_v3  ;;  %v599_v53 = vmax.f32 %v491_v38, 0.0  ;;  %v601_v54 = vmax.f32 %v564_v39, 0.0 }
 0x221   :  { %v602_v51 = vmax.f32 %v493_v42, 0.0  ;;  %v604_v52 = vmax.f32 %v566_v43, 0.0 }
 0x222   :  { %v603_v55 = vmax.f32 %v495_v46, 0.0  ;;  %v605_v56 = vmax.f32 %v568_v48, 0.0 }
 0x223   :  { %v626_v57 = vpack.c.bf16 %v602_v51, %v598_v49  ;;  %v628_v58 = vpack.c.bf16 %v604_v52, %v600_v50 }
 0x224   :  { %v627_v59 = vpack.c.bf16 %v603_v55, %v599_v53  ;;  %v629_v60 = vpack.c.bf16 %v605_v56, %v601_v54  ;;  %v498_v61 = vpop.f32.mrb[8].mxu1  ;;  %v571_v62 = vpop.f32.mrb[16].mxu0  ;;  %v1863_v56 = vmov 1  }
 0x225   :  { %v499_v63 = vadd.f32 %v498_v61, %v2022_v0  ;;  %v572_v4 = vadd.f32 %v571_v62, %v2024_v1  ;;  %v500_v5 = vpop.f32.mrb[9].mxu1  ;;  %v573_v6 = vpop.f32.mrb[17].mxu0  ;;  %1606 = vset.pattern.permute.xlu0 %v1863_v56  ;;  %1607 = vset.pattern.permute.xlu1 %v1863_v56 }
 0x226   :  { %v501_v7 = vadd.f32 %v500_v5, %v2026_v2  ;;  %v574_v8 = vadd.f32 %v573_v6, %v2028_v3  ;;  %v502_v9 = vpop.f32.mrb[10].mxu1  ;;  %v575_v10 = vpop.f32.mrb[18].mxu0  ;;  %941 = vmatprep.mubr.bf16.mxu1 %v627_v59  ;;  %1006 = vmatprep.mubr.bf16.mxu0 %v629_v60 }
 0x227   :  { %v503_v37 = vadd.f32 %v502_v9, %v2022_v0  ;;  %v576_v47 = vadd.f32 %v575_v10, %v2024_v1  ;;  %v504_v11 = vpop.f32.mrb[11].mxu1  ;;  %v577_v12 = vpop.f32.mrb[19].mxu0  ;;  %942 = vmatmul.mubr.bf16.gmra.mrb[20].mxu1 %v626_v57  ;;  %1007 = vmatmul.mubr.bf16.gmra.mrb[28].mxu0 %v628_v58  ;;  %v606_v15 = vmax.f32 %v499_v63, 0.0  ;;  %v608_v16 = vmax.f32 %v572_v4, 0.0  ;;  %v2067_v57 = vld [vmem:[%s2188_s7] ss:$0 sm:$0xff] }
 0x228   :  { %v505_v13 = vadd.f32 %v504_v11, %v2026_v2  ;;  %v578_v14 = vadd.f32 %v577_v12, %v2028_v3  ;;  %v607_v19 = vmax.f32 %v501_v7, 0.0  ;;  %v609_v20 = vmax.f32 %v574_v8, 0.0  ;;  %s1864_s7 = smov 32  }
 0x229   :  { %v610_v17 = vmax.f32 %v503_v37, 0.0  ;;  %v612_v18 = vmax.f32 %v576_v47, 0.0 }
 0x22a   :  { %v611_v21 = vmax.f32 %v505_v13, 0.0  ;;  %v613_v22 = vmax.f32 %v578_v14, 0.0 }
 0x22b   :  { %v630_v23 = vpack.c.bf16 %v610_v17, %v606_v15  ;;  %v632_v24 = vpack.c.bf16 %v612_v18, %v608_v16 }
 0x22c   :  { %v631_v25 = vpack.c.bf16 %v611_v21, %v607_v19  ;;  %v633_v26 = vpack.c.bf16 %v613_v22, %v609_v20  ;;  %v508_v27 = vpop.f32.mrb[12].mxu1  ;;  %v581_v28 = vpop.f32.mrb[20].mxu0 }
 0x22d   :  { %v509_v29 = vadd.f32 %v508_v27, %v2022_v0  ;;  %v582_v31 = vadd.f32 %v581_v28, %v2024_v1  ;;  %v510_v32 = vpop.f32.mrb[13].mxu1  ;;  %v583_v33 = vpop.f32.mrb[21].mxu0 }
 0x22e   :  { %v511_v34 = vadd.f32 %v510_v32, %v2026_v2  ;;  %v584_v35 = vadd.f32 %v583_v33, %v2028_v3  ;;  %v512_v36 = vpop.f32.mrb[14].mxu1  ;;  %v585_v38 = vpop.f32.mrb[22].mxu0  ;;  %949 = vmatprep.mubr.bf16.mxu1 %v631_v25  ;;  %1014 = vmatprep.mubr.bf16.mxu0 %v633_v26 }
 0x22f   :  { %v513_v39 = vadd.f32 %v512_v36, %v2022_v0  ;;  %v586_v40 = vadd.f32 %v585_v38, %v2024_v1  ;;  %v514_v41 = vpop.f32.mrb[15].mxu1  ;;  %v587_v42 = vpop.f32.mrb[23].mxu0  ;;  %950 = vmatmul.mubr.bf16.gmra.mrb[24].mxu1 %v630_v23  ;;  %1015 = vmatmul.mubr.bf16.gmra.mrb[32].mxu0 %v632_v24  ;;  %v614_v45 = vmax.f32 %v509_v29, 0.0  ;;  %v616_v46 = vmax.f32 %v582_v31, 0.0 }
 0x230   :  { %v515_v43 = vadd.f32 %v514_v41, %v2026_v2  ;;  %v588_v44 = vadd.f32 %v587_v42, %v2028_v3  ;;  %v615_v50 = vmax.f32 %v511_v34, 0.0  ;;  %v617_v51 = vmax.f32 %v584_v35, 0.0 }
 0x231   :  { %v618_v48 = vmax.f32 %v513_v39, 0.0  ;;  %v620_v49 = vmax.f32 %v586_v40, 0.0 }
 0x232   :  { %v619_v52 = vmax.f32 %v515_v43, 0.0  ;;  %v621_v53 = vmax.f32 %v588_v44, 0.0 }
 0x233   :  { %v634_v54 = vpack.c.bf16 %v618_v48, %v614_v45  ;;  %v636_v0 = vpack.c.bf16 %v620_v49, %v616_v46 }
 0x234   :  { %v635_v55 = vpack.c.bf16 %v619_v52, %v615_v50  ;;  %v637_v1 = vpack.c.bf16 %v621_v53, %v617_v51 }
 0x236   :  { %957 = vmatprep.mubr.bf16.mxu1 %v635_v55  ;;  %1022 = vmatprep.mubr.bf16.mxu0 %v637_v1 }
 0x237   :  { %958 = vmatmul.mubr.bf16.gmra.mrb[28].mxu1 %v634_v54  ;;  %1023 = vmatmul.mubr.bf16.gmra.mrb[36].mxu0 %v636_v0 }
 0x2f2   :  { %v1514_v2 = vpop.f32.mrb[16].mxu1  ;;  %v1554_v3 = vpop.f32.mrb[24].mxu0 }
 0x2f3   :  { %v1515_v58 = vpop.f32.mrb[17].mxu1  ;;  %v1555_v59 = vpop.f32.mrb[25].mxu0 }
 0x2f4   :  { %v1516_v60 = vadd.f32 %v1515_v58, %v1514_v2  ;;  %v1556_v61 = vadd.f32 %v1555_v59, %v1554_v3  ;;  %v1517_v62 = vpop.f32.mrb[18].mxu1  ;;  %v1557_v63 = vpop.f32.mrb[26].mxu0 }
 0x2f5   :  { %v1518_v4 = vpop.f32.mrb[19].mxu1  ;;  %v1558_v5 = vpop.f32.mrb[27].mxu0 }
 0x2f6   :  { %v936_v6 = vadd.f32 %v1516_v60, %v2067_v57  ;;  %v1519_v7 = vadd.f32 %v1518_v4, %v1517_v62  ;;  %v1559_v8 = vadd.f32 %v1558_v5, %v1557_v63 }
 0x2f8   :  { %v1001_v9 = vadd.f32 %v1556_v61, %v936_v6  ;;  %v939_v10 = vadd.f32 %v1519_v7, %v2067_v57 }
 0x2fa   :  { %v1031_v37 = vrot.slane %v1001_v9, 4  ;;  %v1004_v47 = vadd.f32 %v1559_v8, %v939_v10  ;;  %v1520_v11 = vpop.f32.mrb[20].mxu1  ;;  %v1560_v12 = vpop.f32.mrb[28].mxu0 }
 0x2fb   :  { %v1521_v13 = vpop.f32.mrb[21].mxu1  ;;  %v1561_v14 = vpop.f32.mrb[29].mxu0 }
 0x2fc   :  { %v1032_v15 = vmax.f32 %v1001_v9, %v1031_v37  ;;  %v1037_v16 = vrot.slane %v1004_v47, 4  ;;  %v1522_v17 = vadd.f32 %v1521_v13, %v1520_v11  ;;  %v1562_v18 = vadd.f32 %v1561_v14, %v1560_v12  ;;  %v1523_v19 = vpop.f32.mrb[22].mxu1  ;;  %v1563_v20 = vpop.f32.mrb[30].mxu0 }
 0x2fd   :  { %v1524_v21 = vpop.f32.mrb[23].mxu1  ;;  %v1564_v22 = vpop.f32.mrb[31].mxu0 }
 0x2fe   :  { %v1033_v23 = vrot.slane %v1032_v15, 2  ;;  %v1038_v24 = vmax.f32 %v1004_v47, %v1037_v16  ;;  %v944_v25 = vadd.f32 %v1522_v17, %v2067_v57  ;;  %v1525_v26 = vadd.f32 %v1524_v21, %v1523_v19 }
 0x2ff   :  { %v1565_v27 = vadd.f32 %v1564_v22, %v1563_v20 }
 0x300   :  { %v1034_v28 = vmax.f32 %v1032_v15, %v1033_v23  ;;  %v1039_v29 = vrot.slane %v1038_v24, 2  ;;  %v1009_v31 = vadd.f32 %v1562_v18, %v944_v25  ;;  %v947_v32 = vadd.f32 %v1525_v26, %v2067_v57 }
 0x302   :  { %v1035_v33 = vrot.slane %v1034_v28, 1  ;;  %v1040_v34 = vmax.f32 %v1038_v24, %v1039_v29  ;;  %v1043_v35 = vrot.slane %v1009_v31, 4  ;;  %v2073_v36 = vadd.f32 %v1565_v27, %v947_v32  ;;  %v1526_v38 = vpop.f32.mrb[24].mxu1  ;;  %v1566_v39 = vpop.f32.mrb[32].mxu0 }
 0x303   :  { %v1527_v40 = vpop.f32.mrb[25].mxu1  ;;  %v1567_v41 = vpop.f32.mrb[33].mxu0 }
 0x304   :  { %v1036_v42 = vmax.f32 %v1034_v28, %v1035_v33  ;;  %v1041_v43 = vrot.slane %v1040_v34, 1  ;;  %v1044_v44 = vmax.f32 %v1009_v31, %v1043_v35  ;;  %v1049_v45 = vrot.slane %v2073_v36, 4  ;;  %v1529_v46 = vpop.f32.mrb[26].mxu1  ;;  %v1569_v48 = vpop.f32.mrb[34].mxu0 }
 0x305   :  { %v1528_v49 = vadd.f32 %v1527_v40, %v1526_v38  ;;  %v1568_v50 = vadd.f32 %v1567_v41, %v1566_v39  ;;  %v1530_v51 = vpop.f32.mrb[27].mxu1  ;;  %v1570_v52 = vpop.f32.mrb[35].mxu0 }
 0x306   :  { %v1079_v53 = vsub.f32 %v1001_v9, %v1036_v42  ;;  %v1042_v54 = vmax.f32 %v1040_v34, %v1041_v43  ;;  %v1045_v0 = vrot.slane %v1044_v44, 2  ;;  %v1050_v55 = vmax.f32 %v2073_v36, %v1049_v45 }
 0x307   :  { %v952_v1 = vadd.f32 %v1528_v49, %v2067_v57  ;;  %v1531_v2 = vadd.f32 %v1530_v51, %v1529_v46  ;;  %v1571_v3 = vadd.f32 %v1570_v52, %v1569_v48 }
 0x308   :  { %v1087_v58 = vmul.f32 1.442695, %v1079_v53  ;;  %v1080_v59 = vsub.f32 %v1004_v47, %v1042_v54  ;;  %v1046_v60 = vmax.f32 %v1044_v44, %v1045_v0  ;;  %v1051_v61 = vrot.slane %v1050_v55, 2 }
 0x309   :  { %v1017_v62 = vadd.f32 %v1568_v50, %v952_v1  ;;  %v955_v63 = vadd.f32 %v1531_v2, %v2067_v57 }
 0x30a   :  { %1670 = vpow2.f32 %v1087_v58  ;;  %v1089_v4 = vmul.f32 1.442695, %v1080_v59  ;;  %v1047_v5 = vrot.slane %v1046_v60, 1  ;;  %v1052_v6 = vmax.f32 %v1050_v55, %v1051_v61  ;;  %v1532_v7 = vpop.f32.mrb[28].mxu1  ;;  %v1572_v8 = vpop.f32.mrb[36].mxu0 }
 0x30b   :  { %v1055_v9 = vrot.slane %v1017_v62, 4  ;;  %v1020_v10 = vadd.f32 %v1571_v3, %v955_v63  ;;  %v1533_v37 = vpop.f32.mrb[29].mxu1  ;;  %v1573_v11 = vpop.f32.mrb[37].mxu0 }
 0x30c   :  { %1672 = vpow2.f32 %v1089_v4  ;;  %v1048_v12 = vmax.f32 %v1046_v60, %v1047_v5  ;;  %v1053_v13 = vrot.slane %v1052_v6, 1  ;;  %v1534_v14 = vadd.f32 %v1533_v37, %v1532_v7  ;;  %v1535_v47 = vpop.f32.mrb[30].mxu1  ;;  %v1575_v15 = vpop.f32.mrb[38].mxu0 }
 0x30d   :  { %v1056_v16 = vmax.f32 %v1017_v62, %v1055_v9  ;;  %v1061_v17 = vrot.slane %v1020_v10, 4  ;;  %v1574_v18 = vadd.f32 %v1573_v11, %v1572_v8  ;;  %v1536_v19 = vpop.f32.mrb[31].mxu1  ;;  %v1576_v20 = vpop.f32.mrb[39].mxu0 }
 0x30e   :  { %v1081_v21 = vsub.f32 %v1009_v31, %v1048_v12  ;;  %v1054_v22 = vmax.f32 %v1052_v6, %v1053_v13  ;;  %v960_v23 = vadd.f32 %v1534_v14, %v2067_v57  ;;  %v1537_v24 = vadd.f32 %v1536_v19, %v1535_v47 }
 0x30f   :  { %v1057_v25 = vrot.slane %v1056_v16, 2  ;;  %v1062_v26 = vmax.f32 %v1020_v10, %v1061_v17  ;;  %v1577_v27 = vadd.f32 %v1576_v20, %v1575_v15 }
 0x310   :  { %v1091_v28 = vmul.f32 1.442695, %v1081_v21  ;;  %v1082_v29 = vsub.f32 %v2073_v36, %v1054_v22  ;;  %v1025_v32 = vadd.f32 %v1574_v18, %v960_v23  ;;  %v963_v33 = vadd.f32 %v1537_v24, %v2067_v57 }
 0x311   :  { %v1058_v34 = vmax.f32 %v1056_v16, %v1057_v25  ;;  %v1063_v35 = vrot.slane %v1062_v26, 2 }
 0x312   :  { %1674 = vpow2.f32 %v1091_v28  ;;  %v1093_v38 = vmul.f32 1.442695, %v1082_v29  ;;  %v1067_v39 = vrot.slane %v1025_v32, 4  ;;  %v1028_v40 = vadd.f32 %v1577_v27, %v963_v33 }
 0x313   :  { %v1059_v31 = vrot.slane %v1058_v34, 1  ;;  %v1064_v41 = vmax.f32 %v1062_v26, %v1063_v35 }
 0x314   :  { %v2082_v42 = vpop.eup %1670  ;;  %1676 = vpow2.f32 %v1093_v38  ;;  %v1068_v43 = vmax.f32 %v1025_v32, %v1067_v39  ;;  %v1073_v44 = vrot.slane %v1028_v40, 4 }
 0x315   :  { %v1060_v45 = vmax.f32 %v1058_v34, %v1059_v31  ;;  %v1065_v46 = vrot.slane %v1064_v41, 1  ;;  %v1103_v36 = vrot.slane %v2082_v42, 4 }
 0x316   :  { %v2085_v48 = vpop.eup %1672  ;;  %v1069_v57 = vrot.slane %v1068_v43, 2  ;;  %v1074_v49 = vmax.f32 %v1028_v40, %v1073_v44 }
 0x317   :  { %v1083_v50 = vsub.f32 %v1017_v62, %v1060_v45  ;;  %v1066_v51 = vmax.f32 %v1064_v41, %v1065_v46  ;;  %v1104_v52 = vadd.f32 %v2082_v42, %v1103_v36  ;;  %v1109_v53 = vrot.slane %v2085_v48, 4 }
 0x318   :  { %v1070_v54 = vmax.f32 %v1068_v43, %v1069_v57  ;;  %v1075_v0 = vrot.slane %v1074_v49, 2 }
 0x319   :  { %v1095_v55 = vmul.f32 1.442695, %v1083_v50  ;;  %v1084_v1 = vsub.f32 %v1020_v10, %v1066_v51  ;;  %v1105_v2 = vrot.slane %v1104_v52, 2  ;;  %v1110_v3 = vadd.f32 %v2085_v48, %v1109_v53 }
 0x31a   :  { %v1071_v58 = vrot.slane %v1070_v54, 1  ;;  %v1076_v59 = vmax.f32 %v1074_v49, %v1075_v0 }
 0x31b   :  { %1678 = vpow2.f32 %v1095_v55  ;;  %v1097_v60 = vmul.f32 1.442695, %v1084_v1  ;;  %v1106_v61 = vadd.f32 %v1105_v2, %v1104_v52  ;;  %v1111_v63 = vrot.slane %v1110_v3, 2 }
 0x31c   :  { %v2090_v4 = vpop.eup %1674  ;;  %v1072_v62 = vmax.f32 %v1070_v54, %v1071_v58  ;;  %v1077_v5 = vrot.slane %v1076_v59, 1 }
 0x31d   :  { %1680 = vpow2.f32 %v1097_v60  ;;  %v1107_v6 = vrot.slane %v1106_v61, 1  ;;  %v1112_v7 = vadd.f32 %v1111_v63, %v1110_v3  ;;  %v1115_v8 = vrot.slane %v2090_v4, 4 }
 0x31e   :  { %v2093_v9 = vpop.eup %1676  ;;  %v1085_v10 = vsub.f32 %v1025_v32, %v1072_v62  ;;  %v1078_v37 = vmax.f32 %v1076_v59, %v1077_v5 }
 0x31f   :  { %v1108_v11 = vadd.f32 %v1107_v6, %v1106_v61  ;;  %v1113_v12 = vrot.slane %v1112_v7, 1  ;;  %v1116_v13 = vadd.f32 %v2090_v4, %v1115_v8  ;;  %v1121_v14 = vrot.slane %v2093_v9, 4 }
 0x320   :  { %v1099_v47 = vmul.f32 1.442695, %v1085_v10  ;;  %v1086_v15 = vsub.f32 %v1028_v40, %v1078_v37 }
 0x321   :  { %1682 = vrcp.f32 %v1108_v11  ;;  %v1114_v16 = vadd.f32 %v1113_v12, %v1112_v7  ;;  %v1117_v17 = vrot.slane %v1116_v13, 2  ;;  %v1122_v18 = vadd.f32 %v2093_v9, %v1121_v14  ;;  %v2105_v11 = vld [vmem:[#allocation5] sm:$0xff]  ;;  %v2108_v14 = vld [vmem:[#allocation5 + $0x8] sm:$0xff] }
 0x322   :  { %1684 = vpow2.f32 %v1099_v47  ;;  %v1101_v19 = vmul.f32 1.442695, %v1086_v15 }
 0x323   :  { %1686 = vrcp.f32 %v1114_v16  ;;  %v1118_v20 = vadd.f32 %v1117_v17, %v1116_v13  ;;  %v1123_v21 = vrot.slane %v1122_v18, 2 }
 0x324   :  { %1688 = vpow2.f32 %v1101_v19 }
 0x325   :  { %v1679_v22 = vpop.eup %1678  ;;  %v1119_v23 = vrot.slane %v1118_v20, 1  ;;  %v1124_v24 = vadd.f32 %v1123_v21, %v1122_v18  ;;  %v2113_v18 = vld [vmem:[#allocation5 + $0x10] sm:$0xff] }
 0x326   :  { %v1127_v25 = vrot.slane %v1679_v22, 4 }
 0x327   :  { %v1681_v26 = vpop.eup %1680  ;;  %v1120_v27 = vadd.f32 %v1119_v23, %v1118_v20  ;;  %v1125_v28 = vrot.slane %v1124_v24, 1 }
 0x328   :  { %v1128_v29 = vadd.f32 %v1679_v22, %v1127_v25  ;;  %v1133_v32 = vrot.slane %v1681_v26, 4 }
 0x329   :  { %1690 = vrcp.f32 %v1120_v27  ;;  %v1126_v33 = vadd.f32 %v1125_v28, %v1124_v24  ;;  %v2117_v24 = vld [vmem:[#allocation5 + $0x18] sm:$0xff] }
 0x32a   :  { %v1129_v34 = vrot.slane %v1128_v29, 2  ;;  %v1134_v35 = vadd.f32 %v1681_v26, %v1133_v32 }
 0x32b   :  { %v1683_v38 = vpop.eup %1682  ;;  %1692 = vrcp.f32 %v1126_v33 }
 0x32c   :  { %v1685_v39 = vpop.eup %1684  ;;  %v1159_v40 = vmul.f32 %v1683_v38, %v2082_v42  ;;  %v1130_v31 = vadd.f32 %v1129_v34, %v1128_v29  ;;  %v1135_v41 = vrot.slane %v1134_v35, 2 }
 0x32d   :  { %v1687_v43 = vpop.eup %1686  ;;  %v1139_v44 = vrot.slane %v1685_v39, 4 }
 0x32e   :  { %v1689_v45 = vpop.eup %1688  ;;  %1272 = vperm.xlu0 %1606, %v1159_v40   ;;  %v1131_v46 = vrot.slane %v1130_v31, 1  ;;  %v1136_v36 = vadd.f32 %v1135_v41, %v1134_v35  ;;  %v1160_v50 = vmul.f32 %v1687_v43, %v2085_v48 }
 0x32f   :  { %v1140_v57 = vadd.f32 %v1685_v39, %v1139_v44  ;;  %v1145_v49 = vrot.slane %v1689_v45, 4 }
 0x330   :  { %v1132_v51 = vadd.f32 %v1131_v46, %v1130_v31  ;;  %v1137_v52 = vrot.slane %v1136_v36, 1 }
 0x331   :  { %v1141_v53 = vrot.slane %v1140_v57, 2  ;;  %v1146_v54 = vadd.f32 %v1689_v45, %v1145_v49 }
 0x332   :  { %1276 = vperm.xlu0 %1606, %v1160_v50   ;;  %1694 = vrcp.f32 %v1132_v51  ;;  %v1138_v0 = vadd.f32 %v1137_v52, %v1136_v36  ;;  %v2125_v36 = vld [vmem:[#allocation5 + $0x28] sm:$0xff] }
 0x333   :  { %v1691_v42 = vpop.eup %1690  ;;  %v1142_v55 = vadd.f32 %v1141_v53, %v1140_v57  ;;  %v1147_v1 = vrot.slane %v1146_v54, 2 }
 0x334   :  { %v1161_v2 = vmul.f32 %v1691_v42, %v2090_v4  ;;  %1696 = vrcp.f32 %v1138_v0 }
 0x335   :  { %v1693_v3 = vpop.eup %1692  ;;  %v1143_v58 = vrot.slane %v1142_v55, 1  ;;  %v1148_v59 = vadd.f32 %v1147_v1, %v1146_v54  ;;  %v2129_v1 = vld [vmem:[#allocation5 + $0x30] sm:$0xff] }
 0x336   :  { %1280 = vperm.xlu1 %1607, %v1161_v2   ;;  %v1162_v48 = vmul.f32 %v1693_v3, %v2093_v9 }
 0x337   :  { %v1144_v60 = vadd.f32 %v1143_v58, %v1142_v55  ;;  %v1149_v61 = vrot.slane %v1148_v59, 1 }
 0x339   :  { %1698 = vrcp.f32 %v1144_v60  ;;  %v1150_v63 = vadd.f32 %v1149_v61, %v1148_v59 }
 0x33a   :  { %1284 = vperm.xlu1 %1607, %v1162_v48  }
 0x33b   :  { %1700 = vrcp.f32 %v1150_v63  ;;  %v2133_v63 = vld [vmem:[#allocation5 + $0x38] sm:$0xff] }
 0x33c   :  { %v1695_v62 = vpop.eup %1694 }
 0x33d   :  { %v1163_v5 = vmul.f32 %v1695_v62, %v1679_v22 }
 0x33e   :  { %v1697_v6 = vpop.eup %1696 }
 0x33f   :  { %1288 = vperm.xlu0 %1606, %v1163_v5   ;;  %v1164_v7 = vmul.f32 %v1697_v6, %v1681_v26 }
 0x341   :  { %1292 = vperm.xlu1 %1607, %v1164_v7  }
 0x343   :  { %v1699_v4 = vpop.eup %1698 }
 0x344   :  { %v1165_v8 = vmul.f32 %v1699_v4, %v1685_v39  ;;  %v2121_v39 = vld [vmem:[#allocation5 + $0x20] sm:$0xff] }
 0x345   :  { %v1701_v10 = vpop.eup %1700 }
 0x346   :  { %1296 = vperm.xlu0 %1606, %v1165_v8   ;;  %v1166_v37 = vmul.f32 %v1701_v10, %v1689_v45 }
 0x348   :  { %1300 = vperm.xlu1 %1607, %v1166_v37  }
 0x34a   :  { %1608 = vset.pattern.permute.xlu0 %v1861_v30 }
 0x34b   :  { %1169 = vperm.xlu0 %1608, %v1159_v40  }
 0x34c   :  { %1609 = vset.pattern.permute.xlu1 %v1861_v30 }
 0x34d   :  { %1174 = vperm.xlu1 %1609, %v1160_v50  }
 0x34f   :  { %1184 = vperm.xlu0 %1608, %v1162_v48  }
 0x351   :  { %1179 = vperm.xlu1 %1609, %v1161_v2  }
 0x353   :  { %1194 = vperm.xlu0 %1608, %v1164_v7  }
 0x355   :  { %1189 = vperm.xlu1 %1609, %v1163_v5  }
 0x357   :  { %1204 = vperm.xlu0 %1608, %v1166_v37  }
 0x359   :  { %1199 = vperm.xlu1 %1609, %v1165_v8  }
 0x35b   :  { %1610 = vset.pattern.permute.xlu0 %v1863_v56 }
 0x3ad   :  { %v1273_v9 = vpop.permute.xlu0 %1272 }
 0x3ae   :  { %v1303_v12 = vmul.f32 %v2105_v11, %v1273_v9 }
 0x3b0   :  { %v1311_v30 = vsel %vm132_vm0, %v1303_v12, 0.0 }
 0x3b1   :  { %v1277_v13 = vpop.permute.xlu0 %1276  ;;  %v1312_v19 = vrot.slane %v1311_v30, 4 }
 0x3b2   :  { %v1304_v47 = vmul.f32 %v2108_v14, %v1277_v13 }
 0x3b3   :  { %v1313_v26 = vadd.f32 %v1312_v19, %v1311_v30 }
 0x3b4   :  { %v1318_v15 = vsel %vm132_vm0, %v1304_v47, 0.0 }
 0x3b5   :  { %v1281_v16 = vpop.permute.xlu1 %1280  ;;  %v1319_v17 = vrot.slane %v1318_v15, 4  ;;  %v1314_v35 = vrot.slane %v1313_v26, 2 }
 0x3b6   :  { %v1305_v56 = vmul.f32 %v2113_v18, %v1281_v16 }
 0x3b7   :  { %v1320_v23 = vadd.f32 %v1319_v17, %v1318_v15  ;;  %v1315_v49 = vadd.f32 %v1314_v35, %v1313_v26 }
 0x3b8   :  { %v1325_v20 = vsel %vm132_vm0, %v1305_v56, 0.0 }
 0x3b9   :  { %v1326_v21 = vrot.slane %v1325_v20, 4  ;;  %v1285_v22 = vpop.permute.xlu1 %1284  ;;  %v1321_v32 = vrot.slane %v1320_v23, 2  ;;  %v1316_v3 = vrot.slane %v1315_v49, 1 }
 0x3ba   :  { %v1306_v25 = vmul.f32 %v2117_v24, %v1285_v22 }
 0x3bb   :  { %v1327_v27 = vadd.f32 %v1326_v21, %v1325_v20  ;;  %v1322_v44 = vadd.f32 %v1321_v32, %v1320_v23  ;;  %v1317_v30 = vadd.f32 %v1316_v3, %v1315_v49 }
 0x3bc   :  { %v1332_v28 = vsel %vm132_vm0, %v1306_v25, 0.0 }
 0x3bd   :  { %v1333_v29 = vrot.slane %v1332_v28, 4  ;;  %v1328_v33 = vrot.slane %v1327_v27, 2  ;;  %v1323_v0 = vrot.slane %v1322_v44, 1 }
 0x3be   :  { %v1289_v34 = vpop.permute.xlu0 %1288 }
 0x3bf   :  { %v1334_v38 = vadd.f32 %v1333_v29, %v1332_v28  ;;  %v1307_v40 = vmul.f32 %v2121_v39, %v1289_v34  ;;  %v1329_v45 = vadd.f32 %v1328_v33, %v1327_v27  ;;  %v1324_v7 = vadd.f32 %v1323_v0, %v1322_v44 }
 0x3c0   :  { %v1293_v31 = vpop.permute.xlu1 %1292 }
 0x3c1   :  { %v1335_v41 = vrot.slane %v1334_v38, 2  ;;  %v1339_v43 = vsel %vm132_vm0, %v1307_v40, 0.0  ;;  %v1308_v57 = vmul.f32 %v2125_v36, %v1293_v31  ;;  %v1330_v42 = vrot.slane %v1329_v45, 1 }
 0x3c2   :  { %v1340_v46 = vrot.slane %v1339_v43, 4  ;;  %v1398_v22 = vsel %vm1375_vm2, %v1324_v7, %v1317_v30 }
 0x3c3   :  { %v1336_v50 = vadd.f32 %v1335_v41, %v1334_v38  ;;  %v1346_v52 = vsel %vm132_vm0, %v1308_v57, 0.0  ;;  %v1331_v4 = vadd.f32 %v1330_v42, %v1329_v45 }
 0x3c4   :  { %v1341_v51 = vadd.f32 %v1340_v46, %v1339_v43  ;;  %v1347_v53 = vrot.slane %v1346_v52, 4 }
 0x3c5   :  { %v1297_v54 = vpop.permute.xlu0 %1296  ;;  %v1337_v60 = vrot.slane %v1336_v50, 1  ;;  %v1399_v27 = vsel %vm1377_vm3, %v1331_v4, %v1398_v22 }
 0x3c6   :  { %v1342_v55 = vrot.slane %v1341_v51, 2  ;;  %v1309_v2 = vmul.f32 %v2129_v1, %v1297_v54  ;;  %v1348_v58 = vadd.f32 %v1347_v53, %v1346_v52 }
 0x3c7   :  { %v1301_v59 = vpop.permute.xlu1 %1300  ;;  %v1338_v15 = vadd.f32 %v1337_v60, %v1336_v50 }
 0x3c8   :  { %v1343_v61 = vadd.f32 %v1342_v55, %v1341_v51  ;;  %v1353_v48 = vsel %vm132_vm0, %v1309_v2, 0.0  ;;  %v1310_v62 = vmul.f32 %v2133_v63, %v1301_v59  ;;  %v1349_v5 = vrot.slane %v1348_v58, 2 }
 0x3c9   :  { %v1354_v6 = vrot.slane %v1353_v48, 4  ;;  %v1400_v38 = vsel %vm1379_vm4, %v1338_v15, %v1399_v27 }
 0x3ca   :  { %v1344_v8 = vrot.slane %v1343_v61, 1  ;;  %v1360_v10 = vsel %vm132_vm0, %v1310_v62, 0.0  ;;  %v1170_v37 = vpop.permute.xlu0 %1169  ;;  %v1350_v9 = vadd.f32 %v1349_v5, %v1348_v58 }
 0x3cb   :  { %v1355_v12 = vadd.f32 %v1354_v6, %v1353_v48  ;;  %v1361_v13 = vrot.slane %v1360_v10, 4  ;;  %v1207_v47 = vmul.f32 %v2105_v11, %v1170_v37 }
 0x3cc   :  { %v1345_v16 = vadd.f32 %v1344_v8, %v1343_v61  ;;  %v1175_v17 = vpop.permute.xlu1 %1174  ;;  %v1351_v56 = vrot.slane %v1350_v9, 1 }
 0x3cd   :  { %v1356_v19 = vrot.slane %v1355_v12, 2  ;;  %v1362_v20 = vadd.f32 %v1361_v13, %v1360_v10  ;;  %v1215_v21 = vsel %vm132_vm0, %v1207_v47, 0.0  ;;  %v1208_v25 = vmul.f32 %v2108_v14, %v1175_v17 }
 0x3ce   :  { %v1216_v23 = vrot.slane %v1215_v21, 4  ;;  %v1185_v26 = vpop.permute.xlu0 %1184  ;;  %v1352_v32 = vadd.f32 %v1351_v56, %v1350_v9  ;;  %v1401_v14 = vsel %vm1381_vm5, %v1345_v16, %v1400_v38 }
 0x3cf   :  { %v1357_v11 = vadd.f32 %v1356_v19, %v1355_v12  ;;  %v1363_v28 = vrot.slane %v1362_v20, 2  ;;  %v1210_v29 = vmul.f32 %v2117_v24, %v1185_v26  ;;  %v1222_v34 = vsel %vm132_vm0, %v1208_v25, 0.0 }
 0x3d0   :  { %v1217_v33 = vadd.f32 %v1216_v23, %v1215_v21  ;;  %v1180_v35 = vpop.permute.xlu1 %1179  ;;  %v1223_v31 = vrot.slane %v1222_v34, 4  ;;  %v1402_v54 = vsel %vm1383_vm6, %v1352_v32, %v1401_v14 }
 0x3d1   :  { %v1364_v40 = vadd.f32 %v1363_v28, %v1362_v20  ;;  %v1236_v41 = vsel %vm132_vm0, %v1210_v29, 0.0  ;;  %v1358_v43 = vrot.slane %v1357_v11, 1  ;;  %v1209_v46 = vmul.f32 %v2113_v18, %v1180_v35 }
 0x3d2   :  { %v1218_v44 = vrot.slane %v1217_v33, 2  ;;  %v1237_v45 = vrot.slane %v1236_v41, 4  ;;  %v1195_v57 = vpop.permute.xlu0 %1194  ;;  %v1224_v24 = vadd.f32 %v1223_v31, %v1222_v34 }
 0x3d3   :  { %v1212_v49 = vmul.f32 %v2125_v36, %v1195_v57  ;;  %v1365_v50 = vrot.slane %v1364_v40, 1  ;;  %v1229_v52 = vsel %vm132_vm0, %v1209_v46, 0.0  ;;  %v1359_v18 = vadd.f32 %v1358_v43, %v1357_v11 }
 0x3d4   :  { %v1238_v51 = vadd.f32 %v1237_v45, %v1236_v41  ;;  %v1190_v53 = vpop.permute.xlu1 %1189  ;;  %v1225_v0 = vrot.slane %v1224_v24, 2  ;;  %v1230_v42 = vrot.slane %v1229_v52, 4  ;;  %v1219_v3 = vadd.f32 %v1218_v44, %v1217_v33 }
 0x3d5   :  { %v1250_v55 = vsel %vm132_vm0, %v1212_v49, 0.0  ;;  %v1211_v2 = vmul.f32 %v2121_v39, %v1190_v53  ;;  %v1366_v8 = vadd.f32 %v1365_v50, %v1364_v40 }
 0x3d6   :  { %v1239_v58 = vrot.slane %v1238_v51, 2  ;;  %v1251_v59 = vrot.slane %v1250_v55, 4  ;;  %v1205_v36 = vpop.permute.xlu0 %1204  ;;  %v1226_v60 = vadd.f32 %v1225_v0, %v1224_v24  ;;  %v1231_v61 = vadd.f32 %v1230_v42, %v1229_v52 }
 0x3d7   :  { %v1243_v48 = vsel %vm132_vm0, %v1211_v2, 0.0  ;;  %v1214_v62 = vmul.f32 %v2133_v63, %v1205_v36  ;;  %v1220_v12 = vrot.slane %v1219_v3, 1  ;;  %v1403_v63 = vsel %vm1385_vm7, %v1359_v18, %v1402_v54 }
 0x3d8   :  { %v1240_v5 = vadd.f32 %v1239_v58, %v1238_v51  ;;  %v1252_v6 = vadd.f32 %v1251_v59, %v1250_v55  ;;  %v1244_v7 = vrot.slane %v1243_v48, 4  ;;  %v1200_v4 = vpop.permute.xlu1 %1199  ;;  %v1227_v10 = vrot.slane %v1226_v60, 1 }
 0x3d9   :  { %v1232_v37 = vrot.slane %v1231_v61, 2  ;;  %v1264_v39 = vsel %vm132_vm0, %v1214_v62, 0.0  ;;  %v1213_v9 = vmul.f32 %v2129_v1, %v1200_v4  ;;  %v1404_v25 = vsel %vm1387_vm8, %v1366_v8, %v1403_v63 }
 0x3da   :  { %v1253_v13 = vrot.slane %v1252_v6, 2  ;;  %v1245_v47 = vadd.f32 %v1244_v7, %v1243_v48  ;;  %v1265_v30 = vrot.slane %v1264_v39, 4  ;;  %v1241_v15 = vrot.slane %v1240_v5, 1  ;;  %1405 = vrot.lane.b32.xlu1 %v1404_v25, %s1864_s7 }
 0x3db   :  { %v1233_v16 = vadd.f32 %v1232_v37, %v1231_v61  ;;  %v1257_v17 = vsel %vm132_vm0, %v1213_v9, 0.0  ;;  %v1228_v56 = vadd.f32 %v1227_v10, %v1226_v60  ;;  %v1221_v26 = vadd.f32 %v1220_v12, %v1219_v3 }
 0x3dc   :  { %v1254_v19 = vadd.f32 %v1253_v13, %v1252_v6  ;;  %v1246_v20 = vrot.slane %v1245_v47, 2  ;;  %v1266_v21 = vadd.f32 %v1265_v30, %v1264_v39  ;;  %v1258_v23 = vrot.slane %v1257_v17, 4 }
 0x3dd   :  { %v1234_v22 = vrot.slane %v1233_v16, 1  ;;  %v1376_v32 = vsel %vm1375_vm2, %v1228_v56, %v1221_v26  ;;  %v1242_v33 = vadd.f32 %v1241_v15, %v1240_v5 }
 0x3de   :  { %v1247_v1 = vadd.f32 %v1246_v20, %v1245_v47  ;;  %v1267_v27 = vrot.slane %v1266_v21, 2  ;;  %v1255_v28 = vrot.slane %v1254_v19, 1  ;;  %v1259_v29 = vadd.f32 %v1258_v23, %v1257_v17 }
 0x3df   :  { %v1235_v11 = vadd.f32 %v1234_v22, %v1233_v16 }
 0x3e0   :  { %v1248_v34 = vrot.slane %v1247_v1, 1  ;;  %v1268_v35 = vadd.f32 %v1267_v27, %v1266_v21  ;;  %v1260_v40 = vrot.slane %v1259_v29, 2  ;;  %v1256_v14 = vadd.f32 %v1255_v28, %v1254_v19 }
 0x3e1   :  { %v1378_v38 = vsel %vm1377_vm3, %v1235_v11, %v1376_v32 }
 0x3e2   :  { %v1249_v31 = vadd.f32 %v1248_v34, %v1247_v1  ;;  %v1380_v41 = vsel %vm1379_vm4, %v1242_v33, %v1378_v38  ;;  %v1261_v43 = vadd.f32 %v1260_v40, %v1259_v29  ;;  %v1269_v44 = vrot.slane %v1268_v35, 1 }
 0x3e4   :  { %v1382_v45 = vsel %vm1381_vm5, %v1249_v31, %v1380_v41  ;;  %v1262_v46 = vrot.slane %v1261_v43, 1  ;;  %v1270_v49 = vadd.f32 %v1269_v44, %v1268_v35 }
 0x3e5   :  { %v1384_v57 = vsel %vm1383_vm6, %v1256_v14, %v1382_v45 }
 0x3e6   :  { %v1263_v24 = vadd.f32 %v1262_v46, %v1261_v43 }
 0x3e8   :  { %v1386_v50 = vsel %vm1385_vm7, %v1263_v24, %v1384_v57 }
 0x3e9   :  { %v1388_v51 = vsel %vm1387_vm8, %v1270_v49, %v1386_v50 }
 0x44c   :  { %v1406_v52 = vpop.permute.xlu1 %1405 }
 0x44d   :  { %v1408_v53 = vsel %vm132_vm0, %v1388_v51, %v1406_v52 }
 0x44e   :  { %v1409_v54 = vsel %vm431_vm1, %v1408_v53, 0.0 }
 0x44f   :  { %1410 = vst [vmem:[#allocation11] sm:$0xff] %v1409_v54 }
 0x450   :  { %1831 = shalt.err (!%p1828_p2)
}
 0x451   :  { %s1832_s1 = scalar_lea.hbm %s2189_s8, 128 }
 0x452   :  { %p1833_p3 = scmp.ne.s32.totalorder %s2189_s8, %s1832_s1  ;;  %p1836_p4 = scmp.lt.u32.totalorder %s1832_s1, %s2189_s8 }
 0x454   :  { %p1838_p5 = pnand %p1836_p4, %p1833_p3 }
 0x456   :  { %1841 = shalt.err (!%p1838_p5)
}
 0x457   :  { %1420 = dma.vmem_to_hbm [thread:$0]  %s1418_s25, 128, %s2189_s8, [#allocation4]  }
 0x458   :  { %1848 = dma.done.wait [#allocation4], 128  }
 0x459   :  { %1849 = vsyncadd [#allocation4], 4294967168 }
 0x45a   :  { %1424 = vsyncpa [#allocation3], 1 }
 0x45b   :  { %1425 = vsyncpa [#allocation6], 1 }
 0x45c   :  { %1426 = vsyncpa [#allocation9], 1 }
 0x45d   :  { %1427 = vsyncpa [#allocation4], 1 }

// kernel: tpu_custom_call.1
= control target key start
LH: loop header
LB: loop body
LE: loop exit
PB: predicated region body
PF: predicated region fallthrough
CT: control target
= control target key end

     0   :  { %13 = vsyncpa [#allocation3], 0  ;;  %s2181_s0 = inlined_call_operand.hbm [shape: f32[8,64], index: 0, kind: input, shape index: {}]   ;;  %s2182_s1 = inlined_call_operand.hbm [shape: f32[8,8,32], index: 1, kind: input, shape index: {}]   ;;  %s2183_s2 = inlined_call_operand.hbm [shape: bf16[32,64], index: 2, kind: input, shape index: {}]   ;;  %s2184_s3 = inlined_call_operand.vmem [shape: f32[1,64], index: 3, kind: input, shape index: {}]   ;;  %s2185_s4 = inlined_call_operand.hbm [shape: bf16[64,512], index: 4, kind: input, shape index: {}]   ;;  %s2186_s5 = inlined_call_operand.vmem [shape: f32[1,512], index: 5, kind: input, shape index: {}]   ;;  %s2187_s6 = inlined_call_operand.hbm [shape: bf16[512,128], index: 6, kind: input, shape index: {}]   ;;  %s2188_s7 = inlined_call_operand.vmem [shape: f32[1,128], index: 7, kind: input, shape index: {}]   ;;  %s2189_s8 = inlined_call_operand.hbm [shape: f32[8,128], index: 8, kind: output, shape index: {}]  }
   0x1   :  { %14 = vsyncpa [#allocation6], 0 }
   0x2   :  { %15 = vsyncpa [#allocation9], 0 }
   0x3   :  { %16 = vsyncpa [#allocation4], 0  ;;  %s1850_s27 = smov [#allocation5]   ;;  %s1710_s9 = scalar_lea.hbm %s2182_s1, 1024 }
   0x4   :  { %s32_s28 = sshll.u32 %s1850_s27, 4  ;;  %p1711_p0 = scmp.ne.s32.totalorder %s2182_s1, %s1710_s9  ;;  %s33_s28 = int_to_ptr.vmem [resolvable:$true] %s32_s28 }
   0x5   :  { %p1714_p1 = scmp.lt.u32.totalorder %s1710_s9, %s2182_s1 }
   0x7   :  { %p1716_p2 = pnand %p1714_p1, %p1711_p0 }
   0x9   :  { %1719 = shalt.err (!%p1716_p2)
}
   0xa   :  { %s1720_s14 = scalar_lea.vmem %s33_s28, 1024  ;;  %p1725_p4 = scmp.lt.s32.totalorder %s33_s28, %s33_s28 }
   0xb   :  { %p1721_p3 = scmp.ne.s32.totalorder %s33_s28, %s1720_s14  ;;  %p1726_p5 = scmp.lt.s32.totalorder %s1720_s14, %s1720_s14 }
   0xd   :  { %p1727_p6 = por %p1726_p5, %p1725_p4 }
   0xf   :  { %p1728_p7 = pnand %p1727_p6, %p1721_p3 }
  0x11   :  { %1731 = shalt.err (!%p1728_p7)
}
  0x12   :  { %s1851_s15 = smov 128   ;;  %s1852_s16 = smov 8  }
  0x13   :  { %38 = dma.hbm_to_vmem [thread:$0]  %s2182_s1, 1024, %s33_s28, [#allocation6], %s1851_s15, %s1851_s15, %s1852_s16  }
  0x14   :  { %s1853_s19 = smov [#allocation8]   ;;  %s1732_s23 = scalar_lea.hbm %s2185_s4, 2048 }
  0x15   :  { %s58_s20 = sshll.u32 %s1853_s19, 4  ;;  %p1733_p8 = scmp.ne.s32.totalorder %s2185_s4, %s1732_s23  ;;  %s59_s20 = int_to_ptr.vmem [resolvable:$true] %s58_s20 }
  0x16   :  { %p1736_p9 = scmp.lt.u32.totalorder %s1732_s23, %s2185_s4 }
  0x18   :  { %p1738_p10 = pnand %p1736_p9, %p1733_p8 }
  0x1a   :  { %1741 = shalt.err (!%p1738_p10)
}
  0x1b   :  { %s1742_s29 = scalar_lea.vmem %s59_s20, 2048  ;;  %p1747_p12 = scmp.lt.s32.totalorder %s59_s20, %s59_s20 }
  0x1c   :  { %p1743_p11 = scmp.ne.s32.totalorder %s59_s20, %s1742_s29  ;;  %p1748_p13 = scmp.lt.s32.totalorder %s1742_s29, %s1742_s29 }
  0x1e   :  { %p1749_p0 = por %p1748_p13, %p1747_p12 }
  0x20   :  { %p1750_p1 = pnand %p1749_p0, %p1743_p11 }
  0x22   :  { %1753 = shalt.err (!%p1750_p1)
}
  0x23   :  { %s1854_s1 = smov 256   ;;  %s1855_s28 = smov 16  }
  0x24   :  { %64 = dma.hbm_to_vmem [thread:$0]  %s2185_s4, 2048, %s59_s20, [#allocation9], %s1854_s1, %s1854_s1, %s1855_s28  }
  0x25   :  { %s1856_s10 = smov [#allocation2]   ;;  %s1857_s12 = smov [#allocation7]  }
  0x26   :  { %s23_s11 = sshll.u32 %s1856_s10, 4  ;;  %s44_s13 = sshll.u32 %s1857_s12, 4  ;;  %s24_s11 = int_to_ptr.vmem [resolvable:$true] %s23_s11  ;;  %s1935_s13 = int_to_ptr.vmem [resolvable:$true] %s44_s13 }
  0x27   :  { %s1754_s16 = scalar_lea.hbm %s2181_s0, 128 }
  0x28   :  { %p1755_p2 = scmp.ne.s32.totalorder %s2181_s0, %s1754_s16  ;;  %p1758_p3 = scmp.lt.u32.totalorder %s1754_s16, %s2181_s0 }
  0x2a   :  { %p1760_p4 = pnand %p1758_p3, %p1755_p2 }
  0x2c   :  { %1763 = shalt.err (!%p1760_p4)
}
  0x2d   :  { %s1764_s4 = scalar_lea.vmem %s24_s11, 128  ;;  %p1769_p6 = scmp.lt.s32.totalorder %s24_s11, %s24_s11 }
  0x2e   :  { %p1765_p5 = scmp.ne.s32.totalorder %s24_s11, %s1764_s4  ;;  %p1770_p7 = scmp.lt.s32.totalorder %s1764_s4, %s1764_s4 }
  0x30   :  { %p1771_p8 = por %p1770_p7, %p1769_p6 }
  0x32   :  { %p1772_p9 = pnand %p1771_p8, %p1765_p5 }
  0x34   :  { %1775 = shalt.err (!%p1772_p9)
}
  0x35   :  { %26 = dma.hbm_to_vmem [thread:$0]  %s2181_s0, 128, %s24_s11, [#allocation3]  }
  0x36   :  { %s1776_s25 = scalar_lea.hbm %s2183_s2, 256 }
  0x37   :  { %p1777_p10 = scmp.ne.s32.totalorder %s2183_s2, %s1776_s25  ;;  %p1780_p11 = scmp.lt.u32.totalorder %s1776_s25, %s2183_s2 }
  0x39   :  { %p1782_p12 = pnand %p1780_p11, %p1777_p10 }
  0x3b   :  { %1785 = shalt.err (!%p1782_p12)
}
  0x3c   :  { %s1786_s28 = scalar_lea.vmem %s1935_s13, 256  ;;  %p1791_p0 = scmp.lt.s32.totalorder %s1935_s13, %s1935_s13 }
  0x3d   :  { %p1787_p13 = scmp.ne.s32.totalorder %s1935_s13, %s1786_s28  ;;  %p1792_p1 = scmp.lt.s32.totalorder %s1786_s28, %s1786_s28 }
  0x3f   :  { %p1793_p2 = por %p1792_p1, %p1791_p0 }
  0x41   :  { %p1794_p3 = pnand %p1793_p2, %p1787_p13 }
  0x43   :  { %1797 = shalt.err (!%p1794_p3)
}
  0x44   :  { %s1858_s0 = smov 64   ;;  %s1859_s30 = smov 4  }
  0x45   :  { %50 = dma.hbm_to_vmem [thread:$0]  %s2183_s2, 256, %s1935_s13, [#allocation6], %s1858_s0, %s1858_s0, %s1859_s30  }
  0x46   :  { %s1860_s11 = smov [#allocation10]   ;;  %s1798_s16 = scalar_lea.hbm %s2187_s6, 4096 }
  0x47   :  { %s72_s12 = sshll.u32 %s1860_s11, 4  ;;  %p1799_p4 = scmp.ne.s32.totalorder %s2187_s6, %s1798_s16  ;;  %s73_s12 = int_to_ptr.vmem [resolvable:$true] %s72_s12 }
  0x48   :  { %p1802_p5 = scmp.lt.u32.totalorder %s1798_s16, %s2187_s6 }
  0x4a   :  { %p1804_p6 = pnand %p1802_p5, %p1799_p4 }
  0x4c   :  { %1807 = shalt.err (!%p1804_p6)
}
  0x4d   :  { %s1808_s4 = scalar_lea.vmem %s73_s12, 4096  ;;  %p1813_p8 = scmp.lt.s32.totalorder %s73_s12, %s73_s12 }
  0x4e   :  { %p1809_p7 = scmp.ne.s32.totalorder %s73_s12, %s1808_s4  ;;  %p1814_p9 = scmp.lt.s32.totalorder %s1808_s4, %s1808_s4 }
  0x50   :  { %p1815_p10 = por %p1814_p9, %p1813_p8 }
  0x52   :  { %p1816_p11 = pnand %p1815_p10, %p1809_p7 }
  0x54   :  { %1819 = shalt.err (!%p1816_p11)
}
  0x55   :  { %78 = dma.hbm_to_vmem [thread:$0]  %s2187_s6, 4096, %s73_s12, [#allocation9], %s1858_s0, %s1858_s0, %s1859_s30  }
  0x56   :  { %1842 = dma.done.wait [#allocation3], 128  }
  0x57   :  { %1843 = vsyncadd [#allocation3], 4294967168 }
  0x58   :  { %1844 = dma.done.wait [#allocation6], 1280  }
  0x59   :  { %1845 = vsyncadd [#allocation6], 4294966016 }
  0x5a   :  { %1846 = dma.done.wait [#allocation9], 6144  }
  0x5b   :  { %1847 = vsyncadd [#allocation9], 4294961152  ;;  %v1611_v0 = vld [vmem:[#allocation7] sm:$0xff]   ;;  %v1612_v1 = vld [vmem:[#allocation7 + $0x8] sm:$0xff]   ;;  %vm132_vm0 = vcmask 261120   ;;  %v1861_v30 = vmov 0   ;;  %v216_v35 = vlaneseq }
  0x5c   :  { %1578 = vmatprep.subr.bf16.mxu0 %v1611_v0  ;;  %v97_v2 = vld [vmem:[#allocation5] sm:$0xff]  ;;  %v98_v3 = vld [vmem:[#allocation5 + $0x8] sm:$0xff]  ;;  %v99_v5 = vld [vmem:[#allocation5 + $0x10] sm:$0xff]  ;;  %476 = vmatprep.mubr.bf16.mxu1 %v1861_v30  ;;  %v1862_v33 = vmov 1966171168   ;;  %vm431_vm1 = vcmask 523264  }
  0x5d   :  { %1579 = vmatpush3.bf16.msra.mxu0 %v1611_v0  ;;  %v105_v4 = vpack.c.bf16 %v98_v3, %v97_v2  ;;  %v100_v6 = vld [vmem:[#allocation5 + $0x18] sm:$0xff]  ;;  %v101_v7 = vld [vmem:[#allocation5 + $0x20] sm:$0xff]  ;;  %v102_v8 = vld [vmem:[#allocation5 + $0x28] sm:$0xff]  ;;  %v214_v34 = vunpack.c.l.s4 %v1862_v33  ;;  %v1984_v37 = vshrl.u32 %v216_v35, 7  ;;  %vm1375_vm2 = vcmask 1041409   ;;  %s1865_s24 = smov [#allocation11]  }
  0x5e   :  { %1580 = vmatprep.subr.bf16.mxu0 %v1612_v1  ;;  %v1613_v9 = vld [vmem:[#allocation8 + $0x4] ss:$16 sps:$4 sm:$0xff]   ;;  %v106_v10 = vpack.c.bf16 %v100_v6, %v99_v5  ;;  %v1615_v11 = vld [vmem:[#allocation8 + $0x8] ss:$16 sps:$4 sm:$0xff]   ;;  %v1617_v12 = vld [vmem:[#allocation8 + $0xc] ss:$16 sps:$4 sm:$0xff]   ;;  %v107_v13 = vpack.c.bf16 %v102_v8, %v101_v7 }
  0x5f   :  { %1582 = vmatprep.mubr.msk.bf16.mxu0 %vm132_vm0, %v105_v4  ;;  %444 = vmatprep.subr.bf16.mxu1 %v1613_v9  ;;  %v1618_v14 = vld [vmem:[#allocation8] ss:$16 sps:$4 sm:$0xff]   ;;  %v1619_v15 = vld [vmem:[#allocation8 + $0x24] ss:$16 sps:$4 sm:$0xff]   ;;  %v104_v17 = vld [vmem:[#allocation5 + $0x38] sm:$0xff]  ;;  %v215_v36 = vunpack.c.0.s8 %v214_v34  ;;  %v1988_v47 = vsub.s32 0, %v1984_v37 }
  0x60   :  { %v103_v16 = vld [vmem:[#allocation5 + $0x30] sm:$0xff]  ;;  %445 = vmatpush1.bf16.msra.mxu1 %v1618_v14  ;;  %v1621_v18 = vld [vmem:[#allocation8 + $0x28] ss:$16 sps:$4 sm:$0xff]   ;;  %v1623_v19 = vld [vmem:[#allocation8 + $0x2c] ss:$16 sps:$4 sm:$0xff]   ;;  %vm1377_vm3 = vcmask 1042434  }
  0x61   :  { %1581 = vmatpush3.bf16.msra.mxu0 %v1612_v1  ;;  %v1624_v20 = vld [vmem:[#allocation8 + $0x20] ss:$16 sps:$4 sm:$0xff]   ;;  %446 = vmatprep.subr.bf16.mxu1 %v1619_v15  ;;  %v108_v21 = vpack.c.bf16 %v104_v17, %v103_v16  ;;  %v1625_v22 = vld [vmem:[#allocation8 + $0x44] ss:$16 sps:$4 sm:$0xff]   ;;  %v1629_v23 = vld [vmem:[#allocation8 + $0x4c] ss:$16 sps:$4 sm:$0xff]   ;;  %v218_v38 = vsub.s32 %v215_v36, %v1984_v37 }
  0x62   :  { %517 = vmatprep.subr.bf16.mxu0 %v1617_v12  ;;  %v1627_v24 = vld [vmem:[#allocation8 + $0x48] ss:$16 sps:$4 sm:$0xff]   ;;  %v1630_v25 = vld [vmem:[#allocation8 + $0x40] ss:$16 sps:$4 sm:$0xff]   ;;  %v1631_v26 = vld [vmem:[#allocation8 + $0x64] ss:$16 sps:$4 sm:$0xff]  }
  0x63   :  { %v1635_v27 = vld [vmem:[#allocation8 + $0x6c] ss:$16 sps:$4 sm:$0xff]   ;;  %v1633_v28 = vld [vmem:[#allocation8 + $0x68] ss:$16 sps:$4 sm:$0xff]   ;;  %v1636_v29 = vld [vmem:[#allocation8 + $0x60] ss:$16 sps:$4 sm:$0xff]  }
  0x64   :  { %1583 = vmatmul.mubr.msk.bf16.vlgmr.msra.gmra.mrb[0].mxu0 %vm132_vm0, %v106_v10  ;;  %447 = vmatpush1.bf16.msra.mxu1 %v1624_v20  ;;  %v1638_v31 = vld [vmem:[#allocation10 + $0x40] sm:$0xff]   ;;  %v210_v39 = vld [vmem:[#allocation2] sm:$0xff]  ;;  %v1647_v36 = vld [vmem:[#allocation10 + $0x10] sm:$0xff]   ;;  %vm1379_vm4 = vcmask 1043459   ;;  %vm1381_vm5 = vcmask 1044484   ;;  %vm1383_vm6 = vcmask 1045509  }
  0x65   :  { %1586 = vmatprep.mubr.msk.bf16.mxu0 %vm132_vm0, %v107_v13  ;;  %518 = vmatpush1.bf16.msra.mxu0 %v1615_v11  ;;  %v1640_v32 = vld [vmem:[#allocation10 + $0xc0] sm:$0xff]   ;;  %v219_v40 = vrot.slane %v210_v39, %v218_v38  ;;  %v212_v42 = vcombine.high %v210_v39, %v210_v39  ;;  %v1428_v50 = vld [vmem:[%s2184_s3] ss:$0 sm:$0xff]  ;;  %v1650_v39 = vld [vmem:[#allocation10 + $0x58] sm:$0xff]   ;;  %vm1385_vm7 = vcmask 1046534   ;;  %vm1387_vm8 = vcmask 1047559  }
  0x66   :  { %519 = vmatprep.subr.bf16.mxu0 %v1623_v19  ;;  %448 = vmatprep.subr.bf16.mxu1 %v1625_v22  ;;  %v1639_v12 = vld [vmem:[#allocation10] sm:$0xff]   ;;  %v1642_v17 = vld [vmem:[#allocation10 + $0x48] sm:$0xff]   ;;  %s1417_s25 = sshll.u32 %s1865_s24, 4  ;;  %s1418_s25 = int_to_ptr.vmem [resolvable:$true] %s1417_s25 }
  0x67   :  { %v227_v41 = vcombine.high %v219_v40, %v219_v40  ;;  %v235_v43 = vrot.slane %v219_v40, %v218_v38  ;;  %v226_v45 = vrot.slane %v212_v42, %v218_v38  ;;  %v1641_v13 = vld [vmem:[#allocation10 + $0x80] sm:$0xff]   ;;  %v1652_v40 = vld [vmem:[#allocation10 + $0xd8] sm:$0xff]   ;;  %s1820_s26 = scalar_lea.vmem %s1418_s25, 128  ;;  %p1825_p13 = scmp.lt.s32.totalorder %s1418_s25, %s1418_s25 }
  0x68   :  { %449 = vmatpush1.bf16.msra.mxu1 %v1630_v25  ;;  %v1653_v42 = vld [vmem:[#allocation10 + $0x98] sm:$0xff]   ;;  %p1821_p12 = scmp.ne.s32.totalorder %s1418_s25, %s1820_s26  ;;  %p1826_p0 = scmp.lt.s32.totalorder %s1820_s26, %s1820_s26 }
  0x69   :  { %520 = vmatpush1.bf16.msra.mxu0 %v1621_v18  ;;  %450 = vmatprep.subr.bf16.mxu1 %v1631_v26  ;;  %v249_v44 = vrot.slane %v227_v41, %v218_v38  ;;  %v257_v46 = vcombine.high %v235_v43, %v235_v43  ;;  %v228_v49 = vcombine.high %v226_v45, %v226_v45  ;;  %v1644_v18 = vld [vmem:[#allocation10 + $0xc8] sm:$0xff]   ;;  %v1651_v41 = vld [vmem:[#allocation10 + $0x18] sm:$0xff]  }
  0x6a   :  { %521 = vmatprep.subr.bf16.mxu0 %v1629_v23  ;;  %v242_v51 = vrot.slane %v226_v45, %v218_v38  ;;  %v264_v59 = vrot.slane %v235_v43, %v1988_v47  ;;  %v1654_v43 = vld [vmem:[#allocation10 + $0x60] sm:$0xff]   ;;  %p1827_p1 = por %p1826_p0, %p1825_p13 }
  0x6b   :  { %v259_v48 = vcombine.high %v249_v44, %v249_v44  ;;  %v272_v54 = vrot.slane %v257_v46, %v1988_v47  ;;  %v256_v57 = vrot.slane %v228_v49, %v218_v38  ;;  %v268_v61 = vrot.slane %v249_v44, %v1988_v47  ;;  %v1649_v38 = vld [vmem:[#allocation10 + $0x90] sm:$0xff]   ;;  %v1656_v44 = vld [vmem:[#allocation10 + $0xe0] sm:$0xff]   ;;  %v1660_v49 = vld [vmem:[#allocation10 + $0xe8] sm:$0xff]  }
  0x6c   :  { %1587 = vmatmul.mubr.msk.bf16.gmra.mrb[4].mxu0 %vm132_vm0, %v108_v21  ;;  %451 = vmatpush1.bf16.msra.mxu1 %v1636_v29  ;;  %v258_v0 = vcombine.high %v242_v51, %v242_v51  ;;  %v280_v11 = vrot.slane %v242_v51, %v1988_v47  ;;  %v1655_v45 = vld [vmem:[#allocation10 + $0x20] sm:$0xff]   ;;  %v1661_v51 = vld [vmem:[#allocation10 + $0xa8] sm:$0xff]   ;;  %p1828_p2 = pnand %p1827_p1, %p1821_p12 }
  0x6d   :  { %522 = vmatpush1.bf16.msra.mxu0 %v1627_v24  ;;  %549 = vmatprep.mubr.bf16.mxu0 %v1861_v30  ;;  %v276_v56 = vrot.slane %v259_v48, %v1988_v47  ;;  %v260_v4 = vcombine.high %v256_v57, %v256_v57  ;;  %v284_v21 = vrot.slane %v256_v57, %v1988_v47  ;;  %v1657_v46 = vld [vmem:[#allocation10 + $0xa0] sm:$0xff]   ;;  %v1658_v48 = vld [vmem:[#allocation10 + $0x68] sm:$0xff]   ;;  %v1668_v57 = vld [vmem:[#allocation10 + $0xf8] sm:$0xff]  }
  0x6e   :  { %523 = vmatprep.subr.bf16.mxu0 %v1635_v27  ;;  %1498 = vmatprep.subr.bf16.mxu1 %v1638_v31  ;;  %v288_v8 = vrot.slane %v258_v0, %v1988_v47  ;;  %v1643_v27 = vld [vmem:[#allocation10 + $0x8] sm:$0xff]   ;;  %v1646_v31 = vld [vmem:[#allocation10 + $0x50] sm:$0xff]  }
  0x6f   :  { %v292_v16 = vrot.slane %v260_v4, %v1988_v47 }
  0x71   :  { %524 = vmatpush1.bf16.msra.mxu0 %v1633_v28  ;;  %v1645_v28 = vld [vmem:[#allocation10 + $0x88] sm:$0xff]  }
  0x72   :  { %1538 = vmatprep.subr.bf16.mxu0 %v1640_v32  ;;  %v1648_v32 = vld [vmem:[#allocation10 + $0xd0] sm:$0xff]  }
 0x137   :  { %v1584_v52 = vpop.f32.mrb[0].mxu0 }
 0x138   :  { %v188_v53 = vadd.f32 %v1584_v52, %v1428_v50  ;;  %v179_v55 = vpop.f32.mrb[1].mxu0  ;;  %v1662_v52 = vld [vmem:[#allocation10 + $0x70] sm:$0xff]  }
 0x139   :  { %v180_v58 = vadd.f32 %v1428_v50, %v179_v55  ;;  %v1585_v60 = vpop.f32.mrb[2].mxu0  ;;  %v1665_v55 = vld [vmem:[#allocation10 + $0xb0] sm:$0xff]  }
 0x13a   :  { %v191_v62 = vadd.f32 %v1585_v60, %v1428_v50  ;;  %v182_v63 = vpop.f32.mrb[3].mxu0  ;;  %v303_v2 = vmul.f32 %v272_v54, %v188_v53  ;;  %v1664_v53 = vld [vmem:[#allocation10 + $0xf0] sm:$0xff]   ;;  %v341_v60 = vsub.s32 2, %v1984_v37 }
 0x13b   :  { %v183_v1 = vadd.f32 %v1428_v50, %v182_v63  ;;  %v301_v5 = vmul.f32 %v264_v59, %v180_v58  ;;  %v1663_v54 = vld [vmem:[#allocation10 + $0x30] sm:$0xff]   ;;  %v1667_v58 = vld [vmem:[#allocation10 + $0x38] sm:$0xff]   ;;  %v345_v63 = vsub.s32 3, %v1984_v37 }
 0x13c   :  { %v304_v3 = vmul.f32 %v276_v56, %v191_v62  ;;  %v1666_v56 = vld [vmem:[#allocation10 + $0x78] sm:$0xff]   ;;  %v337_v62 = vsub.s32 1, %v1984_v37 }
 0x13d   :  { %v302_v6 = vmul.f32 %v268_v61, %v183_v1  ;;  %v1669_v59 = vld [vmem:[#allocation10 + $0xb8] sm:$0xff]   ;;  %v329_v61 = vld [vmem:[%s2186_s5] sm:$0xf] }
 0x13e   :  { %v310_v7 = vpack.c.bf16 %v304_v3, %v303_v2  ;;  %v2022_v0 = vrot.slane %v329_v61, %v1988_v47  ;;  %v2024_v1 = vrot.slane %v329_v61, %v341_v60  ;;  %v2026_v2 = vrot.slane %v329_v61, %v337_v62 }
 0x13f   :  { %v309_v9 = vpack.c.bf16 %v302_v6, %v301_v5  ;;  %v1588_v10 = vpop.f32.mrb[4].mxu0  ;;  %v2028_v3 = vrot.slane %v329_v61, %v345_v63 }
 0x140   :  { %v204_v14 = vadd.f32 %v1588_v10, %v1428_v50  ;;  %v195_v15 = vpop.f32.mrb[5].mxu0 }
 0x141   :  { %1451 = vmatmul.mubr.msk.bf16.vlgmr.msra.gmra.mrb[0].mxu1 %vm431_vm1, %v309_v9  ;;  %1455 = vmatmul.mubr.msk.bf16.vlgmr.msra.gmra.mrb[8].mxu0 %vm431_vm1, %v309_v9  ;;  %v196_v19 = vadd.f32 %v1428_v50, %v195_v15  ;;  %v1589_v20 = vpop.f32.mrb[6].mxu0 }
 0x142   :  { %v307_v22 = vmul.f32 %v288_v8, %v204_v14  ;;  %v207_v23 = vadd.f32 %v1589_v20, %v1428_v50  ;;  %v198_v24 = vpop.f32.mrb[7].mxu0  ;;  %486 = vmatprep.mubr.bf16.mxu1 %v1861_v30  ;;  %559 = vmatprep.mubr.bf16.mxu0 %v1861_v30 }
 0x143   :  { %v305_v25 = vmul.f32 %v280_v11, %v196_v19  ;;  %v199_v26 = vadd.f32 %v1428_v50, %v198_v24  ;;  %1499 = vmatpush3.bf16.msra.mxu1 %v1639_v12  ;;  %1539 = vmatpush3.bf16.msra.mxu0 %v1641_v13  ;;  %v1659_v50 = vld [vmem:[#allocation10 + $0x28] sm:$0xff]  }
 0x144   :  { %v308_v29 = vmul.f32 %v292_v16, %v207_v23  ;;  %1500 = vmatprep.subr.bf16.mxu1 %v1642_v17  ;;  %1540 = vmatprep.subr.bf16.mxu0 %v1644_v18 }
 0x145   :  { %v306_v33 = vmul.f32 %v284_v21, %v199_v26 }
 0x146   :  { %v312_v34 = vpack.c.bf16 %v308_v29, %v307_v22 }
 0x147   :  { %v311_v35 = vpack.c.bf16 %v306_v33, %v305_v25  ;;  %1501 = vmatpush3.bf16.msra.mxu1 %v1643_v27  ;;  %1541 = vmatpush3.bf16.msra.mxu0 %v1645_v28 }
 0x148   :  { %1502 = vmatprep.subr.bf16.mxu1 %v1646_v31  ;;  %1542 = vmatprep.subr.bf16.mxu0 %v1648_v32 }
 0x149   :  { %1452 = vmatmul.mubr.msk.bf16.gmra.mrb[4].mxu1 %vm431_vm1, %v310_v7  ;;  %1456 = vmatmul.mubr.msk.bf16.gmra.mrb[12].mxu0 %vm431_vm1, %v310_v7 }
 0x14a   :  { %496 = vmatprep.mubr.bf16.mxu1 %v1861_v30  ;;  %569 = vmatprep.mubr.bf16.mxu0 %v1861_v30 }
 0x14b   :  { %1503 = vmatpush3.bf16.msra.mxu1 %v1647_v36  ;;  %1543 = vmatpush3.bf16.msra.mxu0 %v1649_v38 }
 0x14c   :  { %1504 = vmatprep.subr.bf16.mxu1 %v1650_v39  ;;  %1544 = vmatprep.subr.bf16.mxu0 %v1652_v40 }
 0x14f   :  { %1505 = vmatpush3.bf16.msra.mxu1 %v1651_v41  ;;  %1545 = vmatpush3.bf16.msra.mxu0 %v1653_v42 }
 0x150   :  { %1506 = vmatprep.subr.bf16.mxu1 %v1654_v43  ;;  %1546 = vmatprep.subr.bf16.mxu0 %v1656_v44 }
 0x151   :  { %1453 = vmatmul.mubr.msk.bf16.gmra.mrb[8].mxu1 %vm431_vm1, %v311_v35  ;;  %1457 = vmatmul.mubr.msk.bf16.gmra.mrb[16].mxu0 %vm431_vm1, %v311_v35 }
 0x152   :  { %506 = vmatprep.mubr.bf16.mxu1 %v1861_v30  ;;  %579 = vmatprep.mubr.bf16.mxu0 %v1861_v30 }
 0x153   :  { %1507 = vmatpush3.bf16.msra.mxu1 %v1655_v45  ;;  %1547 = vmatpush3.bf16.msra.mxu0 %v1657_v46 }
 0x154   :  { %1508 = vmatprep.subr.bf16.mxu1 %v1658_v48  ;;  %1548 = vmatprep.subr.bf16.mxu0 %v1660_v49 }
 0x157   :  { %1509 = vmatpush3.bf16.msra.mxu1 %v1659_v50  ;;  %1549 = vmatpush3.bf16.msra.mxu0 %v1661_v51 }
 0x158   :  { %1510 = vmatprep.subr.bf16.mxu1 %v1662_v52  ;;  %1550 = vmatprep.subr.bf16.mxu0 %v1664_v53 }
 0x159   :  { %1454 = vmatmul.mubr.msk.bf16.gmra.mrb[12].mxu1 %vm431_vm1, %v312_v34  ;;  %1458 = vmatmul.mubr.msk.bf16.gmra.mrb[20].mxu0 %vm431_vm1, %v312_v34 }
 0x15b   :  { %1511 = vmatpush3.bf16.msra.mxu1 %v1663_v54  ;;  %1551 = vmatpush3.bf16.msra.mxu0 %v1665_v55 }
 0x15c   :  { %1512 = vmatprep.subr.bf16.mxu1 %v1666_v56  ;;  %1552 = vmatprep.subr.bf16.mxu0 %v1668_v57 }
 0x15f   :  { %1513 = vmatpush3.bf16.msra.mxu1 %v1667_v58  ;;  %1553 = vmatpush3.bf16.msra.mxu0 %v1669_v59 }
 0x214   :  { %v478_v4 = vpop.f32.mrb[0].mxu1  ;;  %v551_v5 = vpop.f32.mrb[8].mxu0 }
 0x215   :  { %v479_v6 = vadd.f32 %v478_v4, %v2022_v0  ;;  %v552_v7 = vadd.f32 %v551_v5, %v2024_v1  ;;  %v480_v8 = vpop.f32.mrb[1].mxu1  ;;  %v553_v9 = vpop.f32.mrb[9].mxu0 }
 0x216   :  { %v481_v10 = vadd.f32 %v480_v8, %v2026_v2  ;;  %v554_v37 = vadd.f32 %v553_v9, %v2028_v3  ;;  %v482_v47 = vpop.f32.mrb[2].mxu1  ;;  %v555_v11 = vpop.f32.mrb[10].mxu0 }
 0x217   :  { %v483_v12 = vadd.f32 %v482_v47, %v2022_v0  ;;  %v556_v13 = vadd.f32 %v555_v11, %v2024_v1  ;;  %v484_v14 = vpop.f32.mrb[3].mxu1  ;;  %v557_v15 = vpop.f32.mrb[11].mxu0  ;;  %v590_v18 = vmax.f32 %v479_v6, 0.0  ;;  %v592_v19 = vmax.f32 %v552_v7, 0.0 }
 0x218   :  { %v485_v16 = vadd.f32 %v484_v14, %v2026_v2  ;;  %v558_v17 = vadd.f32 %v557_v15, %v2028_v3  ;;  %v591_v22 = vmax.f32 %v481_v10, 0.0  ;;  %v593_v23 = vmax.f32 %v554_v37, 0.0 }
 0x219   :  { %v594_v20 = vmax.f32 %v483_v12, 0.0  ;;  %v596_v21 = vmax.f32 %v556_v13, 0.0 }
 0x21a   :  { %v595_v24 = vmax.f32 %v485_v16, 0.0  ;;  %v597_v25 = vmax.f32 %v558_v17, 0.0 }
 0x21b   :  { %v622_v26 = vpack.c.bf16 %v594_v20, %v590_v18  ;;  %v624_v27 = vpack.c.bf16 %v596_v21, %v592_v19 }
 0x21c   :  { %v623_v28 = vpack.c.bf16 %v595_v24, %v591_v22  ;;  %v625_v29 = vpack.c.bf16 %v597_v25, %v593_v23  ;;  %v488_v31 = vpop.f32.mrb[4].mxu1  ;;  %v561_v32 = vpop.f32.mrb[12].mxu0 }
 0x21d   :  { %v489_v33 = vadd.f32 %v488_v31, %v2022_v0  ;;  %v562_v34 = vadd.f32 %v561_v32, %v2024_v1  ;;  %v490_v35 = vpop.f32.mrb[5].mxu1  ;;  %v563_v36 = vpop.f32.mrb[13].mxu0 }
 0x21e   :  { %v491_v38 = vadd.f32 %v490_v35, %v2026_v2  ;;  %v564_v39 = vadd.f32 %v563_v36, %v2028_v3  ;;  %v492_v40 = vpop.f32.mrb[6].mxu1  ;;  %v565_v41 = vpop.f32.mrb[14].mxu0  ;;  %933 = vmatprep.mubr.bf16.mxu1 %v623_v28  ;;  %998 = vmatprep.mubr.bf16.mxu0 %v625_v29 }
 0x21f   :  { %v493_v42 = vadd.f32 %v492_v40, %v2022_v0  ;;  %v566_v43 = vadd.f32 %v565_v41, %v2024_v1  ;;  %v494_v44 = vpop.f32.mrb[7].mxu1  ;;  %v567_v45 = vpop.f32.mrb[15].mxu0  ;;  %934 = vmatmul.mubr.bf16.vlgmr.msra.gmra.mrb[16].mxu1 %v622_v26  ;;  %999 = vmatmul.mubr.bf16.vlgmr.msra.gmra.mrb[24].mxu0 %v624_v27  ;;  %v598_v49 = vmax.f32 %v489_v33, 0.0  ;;  %v600_v50 = vmax.f32 %v562_v34, 0.0 }
 0x220   :  { %v495_v46 = vadd.f32 %v494_v44, %v2026_v2  ;;  %v568_v48 = vadd.f32 %v567_v45, %v2028_v3  ;;  %v599_v53 = vmax.f32 %v491_v38, 0.0  ;;  %v601_v54 = vmax.f32 %v564_v39, 0.0 }
 0x221   :  { %v602_v51 = vmax.f32 %v493_v42, 0.0  ;;  %v604_v52 = vmax.f32 %v566_v43, 0.0 }
 0x222   :  { %v603_v55 = vmax.f32 %v495_v46, 0.0  ;;  %v605_v56 = vmax.f32 %v568_v48, 0.0 }
 0x223   :  { %v626_v57 = vpack.c.bf16 %v602_v51, %v598_v49  ;;  %v628_v58 = vpack.c.bf16 %v604_v52, %v600_v50 }
 0x224   :  { %v627_v59 = vpack.c.bf16 %v603_v55, %v599_v53  ;;  %v629_v60 = vpack.c.bf16 %v605_v56, %v601_v54  ;;  %v498_v61 = vpop.f32.mrb[8].mxu1  ;;  %v571_v62 = vpop.f32.mrb[16].mxu0  ;;  %v1863_v56 = vmov 1  }
 0x225   :  { %v499_v63 = vadd.f32 %v498_v61, %v2022_v0  ;;  %v572_v4 = vadd.f32 %v571_v62, %v2024_v1  ;;  %v500_v5 = vpop.f32.mrb[9].mxu1  ;;  %v573_v6 = vpop.f32.mrb[17].mxu0  ;;  %1606 = vset.pattern.permute.xlu0 %v1863_v56  ;;  %1607 = vset.pattern.permute.xlu1 %v1863_v56 }
 0x226   :  { %v501_v7 = vadd.f32 %v500_v5, %v2026_v2  ;;  %v574_v8 = vadd.f32 %v573_v6, %v2028_v3  ;;  %v502_v9 = vpop.f32.mrb[10].mxu1  ;;  %v575_v10 = vpop.f32.mrb[18].mxu0  ;;  %941 = vmatprep.mubr.bf16.mxu1 %v627_v59  ;;  %1006 = vmatprep.mubr.bf16.mxu0 %v629_v60 }
 0x227   :  { %v503_v37 = vadd.f32 %v502_v9, %v2022_v0  ;;  %v576_v47 = vadd.f32 %v575_v10, %v2024_v1  ;;  %v504_v11 = vpop.f32.mrb[11].mxu1  ;;  %v577_v12 = vpop.f32.mrb[19].mxu0  ;;  %942 = vmatmul.mubr.bf16.gmra.mrb[20].mxu1 %v626_v57  ;;  %1007 = vmatmul.mubr.bf16.gmra.mrb[28].mxu0 %v628_v58  ;;  %v606_v15 = vmax.f32 %v499_v63, 0.0  ;;  %v608_v16 = vmax.f32 %v572_v4, 0.0  ;;  %v2067_v57 = vld [vmem:[%s2188_s7] ss:$0 sm:$0xff] }
 0x228   :  { %v505_v13 = vadd.f32 %v504_v11, %v2026_v2  ;;  %v578_v14 = vadd.f32 %v577_v12, %v2028_v3  ;;  %v607_v19 = vmax.f32 %v501_v7, 0.0  ;;  %v609_v20 = vmax.f32 %v574_v8, 0.0  ;;  %s1864_s7 = smov 32  }
 0x229   :  { %v610_v17 = vmax.f32 %v503_v37, 0.0  ;;  %v612_v18 = vmax.f32 %v576_v47, 0.0 }
 0x22a   :  { %v611_v21 = vmax.f32 %v505_v13, 0.0  ;;  %v613_v22 = vmax.f32 %v578_v14, 0.0 }
 0x22b   :  { %v630_v23 = vpack.c.bf16 %v610_v17, %v606_v15  ;;  %v632_v24 = vpack.c.bf16 %v612_v18, %v608_v16 }
 0x22c   :  { %v631_v25 = vpack.c.bf16 %v611_v21, %v607_v19  ;;  %v633_v26 = vpack.c.bf16 %v613_v22, %v609_v20  ;;  %v508_v27 = vpop.f32.mrb[12].mxu1  ;;  %v581_v28 = vpop.f32.mrb[20].mxu0 }
 0x22d   :  { %v509_v29 = vadd.f32 %v508_v27, %v2022_v0  ;;  %v582_v31 = vadd.f32 %v581_v28, %v2024_v1  ;;  %v510_v32 = vpop.f32.mrb[13].mxu1  ;;  %v583_v33 = vpop.f32.mrb[21].mxu0 }
 0x22e   :  { %v511_v34 = vadd.f32 %v510_v32, %v2026_v2  ;;  %v584_v35 = vadd.f32 %v583_v33, %v2028_v3  ;;  %v512_v36 = vpop.f32.mrb[14].mxu1  ;;  %v585_v38 = vpop.f32.mrb[22].mxu0  ;;  %949 = vmatprep.mubr.bf16.mxu1 %v631_v25  ;;  %1014 = vmatprep.mubr.bf16.mxu0 %v633_v26 }
 0x22f   :  { %v513_v39 = vadd.f32 %v512_v36, %v2022_v0  ;;  %v586_v40 = vadd.f32 %v585_v38, %v2024_v1  ;;  %v514_v41 = vpop.f32.mrb[15].mxu1  ;;  %v587_v42 = vpop.f32.mrb[23].mxu0  ;;  %950 = vmatmul.mubr.bf16.gmra.mrb[24].mxu1 %v630_v23  ;;  %1015 = vmatmul.mubr.bf16.gmra.mrb[32].mxu0 %v632_v24  ;;  %v614_v45 = vmax.f32 %v509_v29, 0.0  ;;  %v616_v46 = vmax.f32 %v582_v31, 0.0 }
 0x230   :  { %v515_v43 = vadd.f32 %v514_v41, %v2026_v2  ;;  %v588_v44 = vadd.f32 %v587_v42, %v2028_v3  ;;  %v615_v50 = vmax.f32 %v511_v34, 0.0  ;;  %v617_v51 = vmax.f32 %v584_v35, 0.0 }
 0x231   :  { %v618_v48 = vmax.f32 %v513_v39, 0.0  ;;  %v620_v49 = vmax.f32 %v586_v40, 0.0 }
 0x232   :  { %v619_v52 = vmax.f32 %v515_v43, 0.0  ;;  %v621_v53 = vmax.f32 %v588_v44, 0.0 }
 0x233   :  { %v634_v54 = vpack.c.bf16 %v618_v48, %v614_v45  ;;  %v636_v0 = vpack.c.bf16 %v620_v49, %v616_v46 }
 0x234   :  { %v635_v55 = vpack.c.bf16 %v619_v52, %v615_v50  ;;  %v637_v1 = vpack.c.bf16 %v621_v53, %v617_v51 }
 0x236   :  { %957 = vmatprep.mubr.bf16.mxu1 %v635_v55  ;;  %1022 = vmatprep.mubr.bf16.mxu0 %v637_v1 }
 0x237   :  { %958 = vmatmul.mubr.bf16.gmra.mrb[28].mxu1 %v634_v54  ;;  %1023 = vmatmul.mubr.bf16.gmra.mrb[36].mxu0 %v636_v0 }
 0x2f2   :  { %v1514_v2 = vpop.f32.mrb[16].mxu1  ;;  %v1554_v3 = vpop.f32.mrb[24].mxu0 }
 0x2f3   :  { %v1515_v58 = vpop.f32.mrb[17].mxu1  ;;  %v1555_v59 = vpop.f32.mrb[25].mxu0 }
 0x2f4   :  { %v1516_v60 = vadd.f32 %v1515_v58, %v1514_v2  ;;  %v1556_v61 = vadd.f32 %v1555_v59, %v1554_v3  ;;  %v1517_v62 = vpop.f32.mrb[18].mxu1  ;;  %v1557_v63 = vpop.f32.mrb[26].mxu0 }
 0x2f5   :  { %v1518_v4 = vpop.f32.mrb[19].mxu1  ;;  %v1558_v5 = vpop.f32.mrb[27].mxu0 }
 0x2f6   :  { %v936_v6 = vadd.f32 %v1516_v60, %v2067_v57  ;;  %v1519_v7 = vadd.f32 %v1518_v4, %v1517_v62  ;;  %v1559_v8 = vadd.f32 %v1558_v5, %v1557_v63 }
 0x2f8   :  { %v1001_v9 = vadd.f32 %v1556_v61, %v936_v6  ;;  %v939_v10 = vadd.f32 %v1519_v7, %v2067_v57 }
 0x2fa   :  { %v1031_v37 = vrot.slane %v1001_v9, 4  ;;  %v1004_v47 = vadd.f32 %v1559_v8, %v939_v10  ;;  %v1520_v11 = vpop.f32.mrb[20].mxu1  ;;  %v1560_v12 = vpop.f32.mrb[28].mxu0 }
 0x2fb   :  { %v1521_v13 = vpop.f32.mrb[21].mxu1  ;;  %v1561_v14 = vpop.f32.mrb[29].mxu0 }
 0x2fc   :  { %v1032_v15 = vmax.f32 %v1001_v9, %v1031_v37  ;;  %v1037_v16 = vrot.slane %v1004_v47, 4  ;;  %v1522_v17 = vadd.f32 %v1521_v13, %v1520_v11  ;;  %v1562_v18 = vadd.f32 %v1561_v14, %v1560_v12  ;;  %v1523_v19 = vpop.f32.mrb[22].mxu1  ;;  %v1563_v20 = vpop.f32.mrb[30].mxu0 }
 0x2fd   :  { %v1524_v21 = vpop.f32.mrb[23].mxu1  ;;  %v1564_v22 = vpop.f32.mrb[31].mxu0 }
 0x2fe   :  { %v1033_v23 = vrot.slane %v1032_v15, 2  ;;  %v1038_v24 = vmax.f32 %v1004_v47, %v1037_v16  ;;  %v944_v25 = vadd.f32 %v1522_v17, %v2067_v57  ;;  %v1525_v26 = vadd.f32 %v1524_v21, %v1523_v19 }
 0x2ff   :  { %v1565_v27 = vadd.f32 %v1564_v22, %v1563_v20 }
 0x300   :  { %v1034_v28 = vmax.f32 %v1032_v15, %v1033_v23  ;;  %v1039_v29 = vrot.slane %v1038_v24, 2  ;;  %v1009_v31 = vadd.f32 %v1562_v18, %v944_v25  ;;  %v947_v32 = vadd.f32 %v1525_v26, %v2067_v57 }
 0x302   :  { %v1035_v33 = vrot.slane %v1034_v28, 1  ;;  %v1040_v34 = vmax.f32 %v1038_v24, %v1039_v29  ;;  %v1043_v35 = vrot.slane %v1009_v31, 4  ;;  %v2073_v36 = vadd.f32 %v1565_v27, %v947_v32  ;;  %v1526_v38 = vpop.f32.mrb[24].mxu1  ;;  %v1566_v39 = vpop.f32.mrb[32].mxu0 }
 0x303   :  { %v1527_v40 = vpop.f32.mrb[25].mxu1  ;;  %v1567_v41 = vpop.f32.mrb[33].mxu0 }
 0x304   :  { %v1036_v42 = vmax.f32 %v1034_v28, %v1035_v33  ;;  %v1041_v43 = vrot.slane %v1040_v34, 1  ;;  %v1044_v44 = vmax.f32 %v1009_v31, %v1043_v35  ;;  %v1049_v45 = vrot.slane %v2073_v36, 4  ;;  %v1529_v46 = vpop.f32.mrb[26].mxu1  ;;  %v1569_v48 = vpop.f32.mrb[34].mxu0 }
 0x305   :  { %v1528_v49 = vadd.f32 %v1527_v40, %v1526_v38  ;;  %v1568_v50 = vadd.f32 %v1567_v41, %v1566_v39  ;;  %v1530_v51 = vpop.f32.mrb[27].mxu1  ;;  %v1570_v52 = vpop.f32.mrb[35].mxu0 }
 0x306   :  { %v1079_v53 = vsub.f32 %v1001_v9, %v1036_v42  ;;  %v1042_v54 = vmax.f32 %v1040_v34, %v1041_v43  ;;  %v1045_v0 = vrot.slane %v1044_v44, 2  ;;  %v1050_v55 = vmax.f32 %v2073_v36, %v1049_v45 }
 0x307   :  { %v952_v1 = vadd.f32 %v1528_v49, %v2067_v57  ;;  %v1531_v2 = vadd.f32 %v1530_v51, %v1529_v46  ;;  %v1571_v3 = vadd.f32 %v1570_v52, %v1569_v48 }
 0x308   :  { %v1087_v58 = vmul.f32 1.442695, %v1079_v53  ;;  %v1080_v59 = vsub.f32 %v1004_v47, %v1042_v54  ;;  %v1046_v60 = vmax.f32 %v1044_v44, %v1045_v0  ;;  %v1051_v61 = vrot.slane %v1050_v55, 2 }
 0x309   :  { %v1017_v62 = vadd.f32 %v1568_v50, %v952_v1  ;;  %v955_v63 = vadd.f32 %v1531_v2, %v2067_v57 }
 0x30a   :  { %1670 = vpow2.f32 %v1087_v58  ;;  %v1089_v4 = vmul.f32 1.442695, %v1080_v59  ;;  %v1047_v5 = vrot.slane %v1046_v60, 1  ;;  %v1052_v6 = vmax.f32 %v1050_v55, %v1051_v61  ;;  %v1532_v7 = vpop.f32.mrb[28].mxu1  ;;  %v1572_v8 = vpop.f32.mrb[36].mxu0 }
 0x30b   :  { %v1055_v9 = vrot.slane %v1017_v62, 4  ;;  %v1020_v10 = vadd.f32 %v1571_v3, %v955_v63  ;;  %v1533_v37 = vpop.f32.mrb[29].mxu1  ;;  %v1573_v11 = vpop.f32.mrb[37].mxu0 }
 0x30c   :  { %1672 = vpow2.f32 %v1089_v4  ;;  %v1048_v12 = vmax.f32 %v1046_v60, %v1047_v5  ;;  %v1053_v13 = vrot.slane %v1052_v6, 1  ;;  %v1534_v14 = vadd.f32 %v1533_v37, %v1532_v7  ;;  %v1535_v47 = vpop.f32.mrb[30].mxu1  ;;  %v1575_v15 = vpop.f32.mrb[38].mxu0 }
 0x30d   :  { %v1056_v16 = vmax.f32 %v1017_v62, %v1055_v9  ;;  %v1061_v17 = vrot.slane %v1020_v10, 4  ;;  %v1574_v18 = vadd.f32 %v1573_v11, %v1572_v8  ;;  %v1536_v19 = vpop.f32.mrb[31].mxu1  ;;  %v1576_v20 = vpop.f32.mrb[39].mxu0 }
 0x30e   :  { %v1081_v21 = vsub.f32 %v1009_v31, %v1048_v12  ;;  %v1054_v22 = vmax.f32 %v1052_v6, %v1053_v13  ;;  %v960_v23 = vadd.f32 %v1534_v14, %v2067_v57  ;;  %v1537_v24 = vadd.f32 %v1536_v19, %v1535_v47 }
 0x30f   :  { %v1057_v25 = vrot.slane %v1056_v16, 2  ;;  %v1062_v26 = vmax.f32 %v1020_v10, %v1061_v17  ;;  %v1577_v27 = vadd.f32 %v1576_v20, %v1575_v15 }
 0x310   :  { %v1091_v28 = vmul.f32 1.442695, %v1081_v21  ;;  %v1082_v29 = vsub.f32 %v2073_v36, %v1054_v22  ;;  %v1025_v32 = vadd.f32 %v1574_v18, %v960_v23  ;;  %v963_v33 = vadd.f32 %v1537_v24, %v2067_v57 }
 0x311   :  { %v1058_v34 = vmax.f32 %v1056_v16, %v1057_v25  ;;  %v1063_v35 = vrot.slane %v1062_v26, 2 }
 0x312   :  { %1674 = vpow2.f32 %v1091_v28  ;;  %v1093_v38 = vmul.f32 1.442695, %v1082_v29  ;;  %v1067_v39 = vrot.slane %v1025_v32, 4  ;;  %v1028_v40 = vadd.f32 %v1577_v27, %v963_v33 }
 0x313   :  { %v1059_v31 = vrot.slane %v1058_v34, 1  ;;  %v1064_v41 = vmax.f32 %v1062_v26, %v1063_v35 }
 0x314   :  { %v2082_v42 = vpop.eup %1670  ;;  %1676 = vpow2.f32 %v1093_v38  ;;  %v1068_v43 = vmax.f32 %v1025_v32, %v1067_v39  ;;  %v1073_v44 = vrot.slane %v1028_v40, 4 }
 0x315   :  { %v1060_v45 = vmax.f32 %v1058_v34, %v1059_v31  ;;  %v1065_v46 = vrot.slane %v1064_v41, 1  ;;  %v1103_v36 = vrot.slane %v2082_v42, 4 }
 0x316   :  { %v2085_v48 = vpop.eup %1672  ;;  %v1069_v57 = vrot.slane %v1068_v43, 2  ;;  %v1074_v49 = vmax.f32 %v1028_v40, %v1073_v44 }
 0x317   :  { %v1083_v50 = vsub.f32 %v1017_v62, %v1060_v45  ;;  %v1066_v51 = vmax.f32 %v1064_v41, %v1065_v46  ;;  %v1104_v52 = vadd.f32 %v2082_v42, %v1103_v36  ;;  %v1109_v53 = vrot.slane %v2085_v48, 4 }
 0x318   :  { %v1070_v54 = vmax.f32 %v1068_v43, %v1069_v57  ;;  %v1075_v0 = vrot.slane %v1074_v49, 2 }
 0x319   :  { %v1095_v55 = vmul.f32 1.442695, %v1083_v50  ;;  %v1084_v1 = vsub.f32 %v1020_v10, %v1066_v51  ;;  %v1105_v2 = vrot.slane %v1104_v52, 2  ;;  %v1110_v3 = vadd.f32 %v2085_v48, %v1109_v53 }
 0x31a   :  { %v1071_v58 = vrot.slane %v1070_v54, 1  ;;  %v1076_v59 = vmax.f32 %v1074_v49, %v1075_v0 }
 0x31b   :  { %1678 = vpow2.f32 %v1095_v55  ;;  %v1097_v60 = vmul.f32 1.442695, %v1084_v1  ;;  %v1106_v61 = vadd.f32 %v1105_v2, %v1104_v52  ;;  %v1111_v63 = vrot.slane %v1110_v3, 2 }
 0x31c   :  { %v2090_v4 = vpop.eup %1674  ;;  %v1072_v62 = vmax.f32 %v1070_v54, %v1071_v58  ;;  %v1077_v5 = vrot.slane %v1076_v59, 1 }
 0x31d   :  { %1680 = vpow2.f32 %v1097_v60  ;;  %v1107_v6 = vrot.slane %v1106_v61, 1  ;;  %v1112_v7 = vadd.f32 %v1111_v63, %v1110_v3  ;;  %v1115_v8 = vrot.slane %v2090_v4, 4 }
 0x31e   :  { %v2093_v9 = vpop.eup %1676  ;;  %v1085_v10 = vsub.f32 %v1025_v32, %v1072_v62  ;;  %v1078_v37 = vmax.f32 %v1076_v59, %v1077_v5 }
 0x31f   :  { %v1108_v11 = vadd.f32 %v1107_v6, %v1106_v61  ;;  %v1113_v12 = vrot.slane %v1112_v7, 1  ;;  %v1116_v13 = vadd.f32 %v2090_v4, %v1115_v8  ;;  %v1121_v14 = vrot.slane %v2093_v9, 4 }
 0x320   :  { %v1099_v47 = vmul.f32 1.442695, %v1085_v10  ;;  %v1086_v15 = vsub.f32 %v1028_v40, %v1078_v37 }
 0x321   :  { %1682 = vrcp.f32 %v1108_v11  ;;  %v1114_v16 = vadd.f32 %v1113_v12, %v1112_v7  ;;  %v1117_v17 = vrot.slane %v1116_v13, 2  ;;  %v1122_v18 = vadd.f32 %v2093_v9, %v1121_v14  ;;  %v2105_v11 = vld [vmem:[#allocation5] sm:$0xff]  ;;  %v2108_v14 = vld [vmem:[#allocation5 + $0x8] sm:$0xff] }
 0x322   :  { %1684 = vpow2.f32 %v1099_v47  ;;  %v1101_v19 = vmul.f32 1.442695, %v1086_v15 }
 0x323   :  { %1686 = vrcp.f32 %v1114_v16  ;;  %v1118_v20 = vadd.f32 %v1117_v17, %v1116_v13  ;;  %v1123_v21 = vrot.slane %v1122_v18, 2 }
 0x324   :  { %1688 = vpow2.f32 %v1101_v19 }
 0x325   :  { %v1679_v22 = vpop.eup %1678  ;;  %v1119_v23 = vrot.slane %v1118_v20, 1  ;;  %v1124_v24 = vadd.f32 %v1123_v21, %v1122_v18  ;;  %v2113_v18 = vld [vmem:[#allocation5 + $0x10] sm:$0xff] }
 0x326   :  { %v1127_v25 = vrot.slane %v1679_v22, 4 }
 0x327   :  { %v1681_v26 = vpop.eup %1680  ;;  %v1120_v27 = vadd.f32 %v1119_v23, %v1118_v20  ;;  %v1125_v28 = vrot.slane %v1124_v24, 1 }
 0x328   :  { %v1128_v29 = vadd.f32 %v1679_v22, %v1127_v25  ;;  %v1133_v32 = vrot.slane %v1681_v26, 4 }
 0x329   :  { %1690 = vrcp.f32 %v1120_v27  ;;  %v1126_v33 = vadd.f32 %v1125_v28, %v1124_v24  ;;  %v2117_v24 = vld [vmem:[#allocation5 + $0x18] sm:$0xff] }
 0x32a   :  { %v1129_v34 = vrot.slane %v1128_v29, 2  ;;  %v1134_v35 = vadd.f32 %v1681_v26, %v1133_v32 }
 0x32b   :  { %v1683_v38 = vpop.eup %1682  ;;  %1692 = vrcp.f32 %v1126_v33 }
 0x32c   :  { %v1685_v39 = vpop.eup %1684  ;;  %v1159_v40 = vmul.f32 %v1683_v38, %v2082_v42  ;;  %v1130_v31 = vadd.f32 %v1129_v34, %v1128_v29  ;;  %v1135_v41 = vrot.slane %v1134_v35, 2 }
 0x32d   :  { %v1687_v43 = vpop.eup %1686  ;;  %v1139_v44 = vrot.slane %v1685_v39, 4 }
 0x32e   :  { %v1689_v45 = vpop.eup %1688  ;;  %1272 = vperm.xlu0 %1606, %v1159_v40   ;;  %v1131_v46 = vrot.slane %v1130_v31, 1  ;;  %v1136_v36 = vadd.f32 %v1135_v41, %v1134_v35  ;;  %v1160_v50 = vmul.f32 %v1687_v43, %v2085_v48 }
 0x32f   :  { %v1140_v57 = vadd.f32 %v1685_v39, %v1139_v44  ;;  %v1145_v49 = vrot.slane %v1689_v45, 4 }
 0x330   :  { %v1132_v51 = vadd.f32 %v1131_v46, %v1130_v31  ;;  %v1137_v52 = vrot.slane %v1136_v36, 1 }
 0x331   :  { %v1141_v53 = vrot.slane %v1140_v57, 2  ;;  %v1146_v54 = vadd.f32 %v1689_v45, %v1145_v49 }
 0x332   :  { %1276 = vperm.xlu0 %1606, %v1160_v50   ;;  %1694 = vrcp.f32 %v1132_v51  ;;  %v1138_v0 = vadd.f32 %v1137_v52, %v1136_v36  ;;  %v2125_v36 = vld [vmem:[#allocation5 + $0x28] sm:$0xff] }
 0x333   :  { %v1691_v42 = vpop.eup %1690  ;;  %v1142_v55 = vadd.f32 %v1141_v53, %v1140_v57  ;;  %v1147_v1 = vrot.slane %v1146_v54, 2 }
 0x334   :  { %v1161_v2 = vmul.f32 %v1691_v42, %v2090_v4  ;;  %1696 = vrcp.f32 %v1138_v0 }
 0x335   :  { %v1693_v3 = vpop.eup %1692  ;;  %v1143_v58 = vrot.slane %v1142_v55, 1  ;;  %v1148_v59 = vadd.f32 %v1147_v1, %v1146_v54  ;;  %v2129_v1 = vld [vmem:[#allocation5 + $0x30] sm:$0xff] }
 0x336   :  { %1280 = vperm.xlu1 %1607, %v1161_v2   ;;  %v1162_v48 = vmul.f32 %v1693_v3, %v2093_v9 }
 0x337   :  { %v1144_v60 = vadd.f32 %v1143_v58, %v1142_v55  ;;  %v1149_v61 = vrot.slane %v1148_v59, 1 }
 0x339   :  { %1698 = vrcp.f32 %v1144_v60  ;;  %v1150_v63 = vadd.f32 %v1149_v61, %v1148_v59 }
 0x33a   :  { %1284 = vperm.xlu1 %1607, %v1162_v48  }
 0x33b   :  { %1700 = vrcp.f32 %v1150_v63  ;;  %v2133_v63 = vld [vmem:[#allocation5 + $0x38] sm:$0xff] }
 0x33c   :  { %v1695_v62 = vpop.eup %1694 }
 0x33d   :  { %v1163_v5 = vmul.f32 %v1695_v62, %v1679_v22 }
 0x33e   :  { %v1697_v6 = vpop.eup %1696 }
 0x33f   :  { %1288 = vperm.xlu0 %1606, %v1163_v5   ;;  %v1164_v7 = vmul.f32 %v1697_v6, %v1681_v26 }
 0x341   :  { %1292 = vperm.xlu1 %1607, %v1164_v7  }
 0x343   :  { %v1699_v4 = vpop.eup %1698 }
 0x344   :  { %v1165_v8 = vmul.f32 %v1699_v4, %v1685_v39  ;;  %v2121_v39 = vld [vmem:[#allocation5 + $0x20] sm:$0xff] }
 0x345   :  { %v1701_v10 = vpop.eup %1700 }
 0x346   :  { %1296 = vperm.xlu0 %1606, %v1165_v8   ;;  %v1166_v37 = vmul.f32 %v1701_v10, %v1689_v45 }
 0x348   :  { %1300 = vperm.xlu1 %1607, %v1166_v37  }
 0x34a   :  { %1608 = vset.pattern.permute.xlu0 %v1861_v30 }
 0x34b   :  { %1169 = vperm.xlu0 %1608, %v1159_v40  }
 0x34c   :  { %1609 = vset.pattern.permute.xlu1 %v1861_v30 }
 0x34d   :  { %1174 = vperm.xlu1 %1609, %v1160_v50  }
 0x34f   :  { %1184 = vperm.xlu0 %1608, %v1162_v48  }
 0x351   :  { %1179 = vperm.xlu1 %1609, %v1161_v2  }
 0x353   :  { %1194 = vperm.xlu0 %1608, %v1164_v7  }
 0x355   :  { %1189 = vperm.xlu1 %1609, %v1163_v5  }
 0x357   :  { %1204 = vperm.xlu0 %1608, %v1166_v37  }
 0x359   :  { %1199 = vperm.xlu1 %1609, %v1165_v8  }
 0x35b   :  { %1610 = vset.pattern.permute.xlu0 %v1863_v56 }
 0x3ad   :  { %v1273_v9 = vpop.permute.xlu0 %1272 }
 0x3ae   :  { %v1303_v12 = vmul.f32 %v2105_v11, %v1273_v9 }
 0x3b0   :  { %v1311_v30 = vsel %vm132_vm0, %v1303_v12, 0.0 }
 0x3b1   :  { %v1277_v13 = vpop.permute.xlu0 %1276  ;;  %v1312_v19 = vrot.slane %v1311_v30, 4 }
 0x3b2   :  { %v1304_v47 = vmul.f32 %v2108_v14, %v1277_v13 }
 0x3b3   :  { %v1313_v26 = vadd.f32 %v1312_v19, %v1311_v30 }
 0x3b4   :  { %v1318_v15 = vsel %vm132_vm0, %v1304_v47, 0.0 }
 0x3b5   :  { %v1281_v16 = vpop.permute.xlu1 %1280  ;;  %v1319_v17 = vrot.slane %v1318_v15, 4  ;;  %v1314_v35 = vrot.slane %v1313_v26, 2 }
 0x3b6   :  { %v1305_v56 = vmul.f32 %v2113_v18, %v1281_v16 }
 0x3b7   :  { %v1320_v23 = vadd.f32 %v1319_v17, %v1318_v15  ;;  %v1315_v49 = vadd.f32 %v1314_v35, %v1313_v26 }
 0x3b8   :  { %v1325_v20 = vsel %vm132_vm0, %v1305_v56, 0.0 }
 0x3b9   :  { %v1326_v21 = vrot.slane %v1325_v20, 4  ;;  %v1285_v22 = vpop.permute.xlu1 %1284  ;;  %v1321_v32 = vrot.slane %v1320_v23, 2  ;;  %v1316_v3 = vrot.slane %v1315_v49, 1 }
 0x3ba   :  { %v1306_v25 = vmul.f32 %v2117_v24, %v1285_v22 }
 0x3bb   :  { %v1327_v27 = vadd.f32 %v1326_v21, %v1325_v20  ;;  %v1322_v44 = vadd.f32 %v1321_v32, %v1320_v23  ;;  %v1317_v30 = vadd.f32 %v1316_v3, %v1315_v49 }
 0x3bc   :  { %v1332_v28 = vsel %vm132_vm0, %v1306_v25, 0.0 }
 0x3bd   :  { %v1333_v29 = vrot.slane %v1332_v28, 4  ;;  %v1328_v33 = vrot.slane %v1327_v27, 2  ;;  %v1323_v0 = vrot.slane %v1322_v44, 1 }
 0x3be   :  { %v1289_v34 = vpop.permute.xlu0 %1288 }
 0x3bf   :  { %v1334_v38 = vadd.f32 %v1333_v29, %v1332_v28  ;;  %v1307_v40 = vmul.f32 %v2121_v39, %v1289_v34  ;;  %v1329_v45 = vadd.f32 %v1328_v33, %v1327_v27  ;;  %v1324_v7 = vadd.f32 %v1323_v0, %v1322_v44 }
 0x3c0   :  { %v1293_v31 = vpop.permute.xlu1 %1292 }
 0x3c1   :  { %v1335_v41 = vrot.slane %v1334_v38, 2  ;;  %v1339_v43 = vsel %vm132_vm0, %v1307_v40, 0.0  ;;  %v1308_v57 = vmul.f32 %v2125_v36, %v1293_v31  ;;  %v1330_v42 = vrot.slane %v1329_v45, 1 }
 0x3c2   :  { %v1340_v46 = vrot.slane %v1339_v43, 4  ;;  %v1398_v22 = vsel %vm1375_vm2, %v1324_v7, %v1317_v30 }
 0x3c3   :  { %v1336_v50 = vadd.f32 %v1335_v41, %v1334_v38  ;;  %v1346_v52 = vsel %vm132_vm0, %v1308_v57, 0.0  ;;  %v1331_v4 = vadd.f32 %v1330_v42, %v1329_v45 }
 0x3c4   :  { %v1341_v51 = vadd.f32 %v1340_v46, %v1339_v43  ;;  %v1347_v53 = vrot.slane %v1346_v52, 4 }
 0x3c5   :  { %v1297_v54 = vpop.permute.xlu0 %1296  ;;  %v1337_v60 = vrot.slane %v1336_v50, 1  ;;  %v1399_v27 = vsel %vm1377_vm3, %v1331_v4, %v1398_v22 }
 0x3c6   :  { %v1342_v55 = vrot.slane %v1341_v51, 2  ;;  %v1309_v2 = vmul.f32 %v2129_v1, %v1297_v54  ;;  %v1348_v58 = vadd.f32 %v1347_v53, %v1346_v52 }
 0x3c7   :  { %v1301_v59 = vpop.permute.xlu1 %1300  ;;  %v1338_v15 = vadd.f32 %v1337_v60, %v1336_v50 }
 0x3c8   :  { %v1343_v61 = vadd.f32 %v1342_v55, %v1341_v51  ;;  %v1353_v48 = vsel %vm132_vm0, %v1309_v2, 0.0  ;;  %v1310_v62 = vmul.f32 %v2133_v63, %v1301_v59  ;;  %v1349_v5 = vrot.slane %v1348_v58, 2 }
 0x3c9   :  { %v1354_v6 = vrot.slane %v1353_v48, 4  ;;  %v1400_v38 = vsel %vm1379_vm4, %v1338_v15, %v1399_v27 }
 0x3ca   :  { %v1344_v8 = vrot.slane %v1343_v61, 1  ;;  %v1360_v10 = vsel %vm132_vm0, %v1310_v62, 0.0  ;;  %v1170_v37 = vpop.permute.xlu0 %1169  ;;  %v1350_v9 = vadd.f32 %v1349_v5, %v1348_v58 }
 0x3cb   :  { %v1355_v12 = vadd.f32 %v1354_v6, %v1353_v48  ;;  %v1361_v13 = vrot.slane %v1360_v10, 4  ;;  %v1207_v47 = vmul.f32 %v2105_v11, %v1170_v37 }
 0x3cc   :  { %v1345_v16 = vadd.f32 %v1344_v8, %v1343_v61  ;;  %v1175_v17 = vpop.permute.xlu1 %1174  ;;  %v1351_v56 = vrot.slane %v1350_v9, 1 }
 0x3cd   :  { %v1356_v19 = vrot.slane %v1355_v12, 2  ;;  %v1362_v20 = vadd.f32 %v1361_v13, %v1360_v10  ;;  %v1215_v21 = vsel %vm132_vm0, %v1207_v47, 0.0  ;;  %v1208_v25 = vmul.f32 %v2108_v14, %v1175_v17 }
 0x3ce   :  { %v1216_v23 = vrot.slane %v1215_v21, 4  ;;  %v1185_v26 = vpop.permute.xlu0 %1184  ;;  %v1352_v32 = vadd.f32 %v1351_v56, %v1350_v9  ;;  %v1401_v14 = vsel %vm1381_vm5, %v1345_v16, %v1400_v38 }
 0x3cf   :  { %v1357_v11 = vadd.f32 %v1356_v19, %v1355_v12  ;;  %v1363_v28 = vrot.slane %v1362_v20, 2  ;;  %v1210_v29 = vmul.f32 %v2117_v24, %v1185_v26  ;;  %v1222_v34 = vsel %vm132_vm0, %v1208_v25, 0.0 }
 0x3d0   :  { %v1217_v33 = vadd.f32 %v1216_v23, %v1215_v21  ;;  %v1180_v35 = vpop.permute.xlu1 %1179  ;;  %v1223_v31 = vrot.slane %v1222_v34, 4  ;;  %v1402_v54 = vsel %vm1383_vm6, %v1352_v32, %v1401_v14 }
 0x3d1   :  { %v1364_v40 = vadd.f32 %v1363_v28, %v1362_v20  ;;  %v1236_v41 = vsel %vm132_vm0, %v1210_v29, 0.0  ;;  %v1358_v43 = vrot.slane %v1357_v11, 1  ;;  %v1209_v46 = vmul.f32 %v2113_v18, %v1180_v35 }
 0x3d2   :  { %v1218_v44 = vrot.slane %v1217_v33, 2  ;;  %v1237_v45 = vrot.slane %v1236_v41, 4  ;;  %v1195_v57 = vpop.permute.xlu0 %1194  ;;  %v1224_v24 = vadd.f32 %v1223_v31, %v1222_v34 }
 0x3d3   :  { %v1212_v49 = vmul.f32 %v2125_v36, %v1195_v57  ;;  %v1365_v50 = vrot.slane %v1364_v40, 1  ;;  %v1229_v52 = vsel %vm132_vm0, %v1209_v46, 0.0  ;;  %v1359_v18 = vadd.f32 %v1358_v43, %v1357_v11 }
 0x3d4   :  { %v1238_v51 = vadd.f32 %v1237_v45, %v1236_v41  ;;  %v1190_v53 = vpop.permute.xlu1 %1189  ;;  %v1225_v0 = vrot.slane %v1224_v24, 2  ;;  %v1230_v42 = vrot.slane %v1229_v52, 4  ;;  %v1219_v3 = vadd.f32 %v1218_v44, %v1217_v33 }
 0x3d5   :  { %v1250_v55 = vsel %vm132_vm0, %v1212_v49, 0.0  ;;  %v1211_v2 = vmul.f32 %v2121_v39, %v1190_v53  ;;  %v1366_v8 = vadd.f32 %v1365_v50, %v1364_v40 }
 0x3d6   :  { %v1239_v58 = vrot.slane %v1238_v51, 2  ;;  %v1251_v59 = vrot.slane %v1250_v55, 4  ;;  %v1205_v36 = vpop.permute.xlu0 %1204  ;;  %v1226_v60 = vadd.f32 %v1225_v0, %v1224_v24  ;;  %v1231_v61 = vadd.f32 %v1230_v42, %v1229_v52 }
 0x3d7   :  { %v1243_v48 = vsel %vm132_vm0, %v1211_v2, 0.0  ;;  %v1214_v62 = vmul.f32 %v2133_v63, %v1205_v36  ;;  %v1220_v12 = vrot.slane %v1219_v3, 1  ;;  %v1403_v63 = vsel %vm1385_vm7, %v1359_v18, %v1402_v54 }
 0x3d8   :  { %v1240_v5 = vadd.f32 %v1239_v58, %v1238_v51  ;;  %v1252_v6 = vadd.f32 %v1251_v59, %v1250_v55  ;;  %v1244_v7 = vrot.slane %v1243_v48, 4  ;;  %v1200_v4 = vpop.permute.xlu1 %1199  ;;  %v1227_v10 = vrot.slane %v1226_v60, 1 }
 0x3d9   :  { %v1232_v37 = vrot.slane %v1231_v61, 2  ;;  %v1264_v39 = vsel %vm132_vm0, %v1214_v62, 0.0  ;;  %v1213_v9 = vmul.f32 %v2129_v1, %v1200_v4  ;;  %v1404_v25 = vsel %vm1387_vm8, %v1366_v8, %v1403_v63 }
 0x3da   :  { %v1253_v13 = vrot.slane %v1252_v6, 2  ;;  %v1245_v47 = vadd.f32 %v1244_v7, %v1243_v48  ;;  %v1265_v30 = vrot.slane %v1264_v39, 4  ;;  %v1241_v15 = vrot.slane %v1240_v5, 1  ;;  %1405 = vrot.lane.b32.xlu1 %v1404_v25, %s1864_s7 }
 0x3db   :  { %v1233_v16 = vadd.f32 %v1232_v37, %v1231_v61  ;;  %v1257_v17 = vsel %vm132_vm0, %v1213_v9, 0.0  ;;  %v1228_v56 = vadd.f32 %v1227_v10, %v1226_v60  ;;  %v1221_v26 = vadd.f32 %v1220_v12, %v1219_v3 }
 0x3dc   :  { %v1254_v19 = vadd.f32 %v1253_v13, %v1252_v6  ;;  %v1246_v20 = vrot.slane %v1245_v47, 2  ;;  %v1266_v21 = vadd.f32 %v1265_v30, %v1264_v39  ;;  %v1258_v23 = vrot.slane %v1257_v17, 4 }
 0x3dd   :  { %v1234_v22 = vrot.slane %v1233_v16, 1  ;;  %v1376_v32 = vsel %vm1375_vm2, %v1228_v56, %v1221_v26  ;;  %v1242_v33 = vadd.f32 %v1241_v15, %v1240_v5 }
 0x3de   :  { %v1247_v1 = vadd.f32 %v1246_v20, %v1245_v47  ;;  %v1267_v27 = vrot.slane %v1266_v21, 2  ;;  %v1255_v28 = vrot.slane %v1254_v19, 1  ;;  %v1259_v29 = vadd.f32 %v1258_v23, %v1257_v17 }
 0x3df   :  { %v1235_v11 = vadd.f32 %v1234_v22, %v1233_v16 }
 0x3e0   :  { %v1248_v34 = vrot.slane %v1247_v1, 1  ;;  %v1268_v35 = vadd.f32 %v1267_v27, %v1266_v21  ;;  %v1260_v40 = vrot.slane %v1259_v29, 2  ;;  %v1256_v14 = vadd.f32 %v1255_v28, %v1254_v19 }
 0x3e1   :  { %v1378_v38 = vsel %vm1377_vm3, %v1235_v11, %v1376_v32 }
 0x3e2   :  { %v1249_v31 = vadd.f32 %v1248_v34, %v1247_v1  ;;  %v1380_v41 = vsel %vm1379_vm4, %v1242_v33, %v1378_v38  ;;  %v1261_v43 = vadd.f32 %v1260_v40, %v1259_v29  ;;  %v1269_v44 = vrot.slane %v1268_v35, 1 }
 0x3e4   :  { %v1382_v45 = vsel %vm1381_vm5, %v1249_v31, %v1380_v41  ;;  %v1262_v46 = vrot.slane %v1261_v43, 1  ;;  %v1270_v49 = vadd.f32 %v1269_v44, %v1268_v35 }
 0x3e5   :  { %v1384_v57 = vsel %vm1383_vm6, %v1256_v14, %v1382_v45 }
 0x3e6   :  { %v1263_v24 = vadd.f32 %v1262_v46, %v1261_v43 }
 0x3e8   :  { %v1386_v50 = vsel %vm1385_vm7, %v1263_v24, %v1384_v57 }
 0x3e9   :  { %v1388_v51 = vsel %vm1387_vm8, %v1270_v49, %v1386_v50 }
 0x44c   :  { %v1406_v52 = vpop.permute.xlu1 %1405 }
 0x44d   :  { %v1408_v53 = vsel %vm132_vm0, %v1388_v51, %v1406_v52 }
 0x44e   :  { %v1409_v54 = vsel %vm431_vm1, %v1408_v53, 0.0 }
 0x44f   :  { %1410 = vst [vmem:[#allocation11] sm:$0xff] %v1409_v54 }
 0x450   :  { %1831 = shalt.err (!%p1828_p2)
}
 0x451   :  { %s1832_s1 = scalar_lea.hbm %s2189_s8, 128 }
 0x452   :  { %p1833_p3 = scmp.ne.s32.totalorder %s2189_s8, %s1832_s1  ;;  %p1836_p4 = scmp.lt.u32.totalorder %s1832_s1, %s2189_s8 }
 0x454   :  { %p1838_p5 = pnand %p1836_p4, %p1833_p3 }
 0x456   :  { %1841 = shalt.err (!%p1838_p5)
}
 0x457   :  { %1420 = dma.vmem_to_hbm [thread:$0]  %s1418_s25, 128, %s2189_s8, [#allocation4]  }
 0x458   :  { %1848 = dma.done.wait [#allocation4], 128  }
 0x459   :  { %1849 = vsyncadd [#allocation4], 4294967168 }
 0x45a   :  { %1424 = vsyncpa [#allocation3], 1 }
 0x45b   :  { %1425 = vsyncpa [#allocation6], 1 }
 0x45c   :  { %1426 = vsyncpa [#allocation9], 1 }
 0x45d   :  { %1427 = vsyncpa [#allocation4], 1 }

</bundles_post_ra>
